<compile_context>
chip_gen: v5e
topology: v5e:2x2
jax: 0.10.0
libtpu: 0.0.40
codegen_flags: <defaults>
</compile_context>

<pallas_src>
import jax
import jax.numpy as jnp
from jax.experimental import pallas as pl
from jax.experimental.pallas import tpu as pltpu


def _round_up(x: int, m: int) -> int:
    return ((x + m - 1) // m) * m


def _choose_tile(b: int, d: int, itemsize: int) -> int:
    """Pick the batch tile TB (multiple of 128).

    Keep 2 inputs x 2 pipeline buffers well under the smallest default
    scoped-VMEM budget across generations (v5e: 16 MiB, v7x: 32 MiB) by
    targeting <= 8 MiB of input buffers. 512-2048 rows sit at ~85-86% of the
    HBM roofline for this memory-bound op, so default to 1024.
    """
    budget = 8 << 20
    tb = 1024
    while tb > 128 and 2 * 2 * tb * d * itemsize > budget:
        tb //= 2
    # Don't over-tile tiny batches: a single (padded) tile is enough.
    return min(tb, _round_up(b, 128))


def _dot_score_kernel(u_ref, i_ref, o_ref):
    # u_ref, i_ref: (D, TB) bf16 tiles in VMEM (D on sublanes, batch on lanes).
    # Upcast to f32 before the multiply/accumulate (v5e VPU has no bf16 ALU;
    # f32 accumulate keeps numerics tight everywhere).
    u = u_ref[...].astype(jnp.float32)
    v = i_ref[...].astype(jnp.float32)
    # Sublane reduce over D -> (1, TB): lane-dense output, unmasked stores.
    o_ref[...] = jnp.sum(u * v, axis=0, keepdims=True)


def mf_scores(user_vecs: jax.Array, item_vecs: jax.Array, tb: int | None = None) -> jax.Array:
    """Per-pair dot product of user/item embedding vectors via Pallas.

    user_vecs, item_vecs: (D, B) arrays (bf16 or f32), batch on the lane axis.
    Returns scores of shape (B,) in float32.
    """
    D, B = user_vecs.shape
    assert item_vecs.shape == (D, B), (item_vecs.shape, user_vecs.shape)

    itemsize = jnp.dtype(user_vecs.dtype).itemsize
    if tb is None:
        tb = _choose_tile(B, D, itemsize)

    b_pad = _round_up(B, tb)
    if b_pad != B:
        pad = b_pad - B
        user_vecs = jnp.pad(user_vecs, ((0, 0), (0, pad)))
        item_vecs = jnp.pad(item_vecs, ((0, 0), (0, pad)))

    grid = (b_pad // tb,)

    out = pl.pallas_call(
        _dot_score_kernel,
        out_shape=jax.ShapeDtypeStruct((1, b_pad), jnp.float32),
        grid_spec=pltpu.PrefetchScalarGridSpec(
            num_scalar_prefetch=0,
            grid=grid,
            in_specs=[
                pl.BlockSpec((D, tb), lambda i: (0, i)),
                pl.BlockSpec((D, tb), lambda i: (0, i)),
            ],
            out_specs=pl.BlockSpec((1, tb), lambda i: (0, i)),
        ),
        compiler_params=pltpu.CompilerParams(
            # Batch tiles are independent -> let v7x's two TCs split them.
            dimension_semantics=("parallel",),
        ),
    )(user_vecs, item_vecs)

    return out[0, :B]


class BaseTrainingModelJAX:
    """JAX/Pallas counterpart of BaseTrainingModel (placeholder recommender).

    Deterministically-initialized embedding tables; forward(users, items)
    returns per-pair dot-product scores with the reduction done in Pallas.
    """

    def __init__(self, num_users: int = 64, num_items: int = 128, dim: int = 128):
        key = jax.random.PRNGKey(0)
        ku, ki = jax.random.split(key)
        # Tables stored transposed [D, N] in bf16: halves HBM bytes for a
        # bandwidth-bound kernel, and the gather lands activations directly in
        # the lane-dense (D, B) layout the kernel consumes.
        self.user_emb = (jax.random.normal(ku, (dim, num_users), dtype=jnp.float32) * 0.1).astype(jnp.bfloat16)
        self.item_emb = (jax.random.normal(ki, (dim, num_items), dtype=jnp.float32) * 0.1).astype(jnp.bfloat16)

    def forward(self, users: jax.Array, items: jax.Array) -> jax.Array:
        # Gather one embedding column per pair in XLA; mul+reduce runs in Pallas.
        # TODO(synk): for production-sized tables, fuse this gather into the
        # kernel (scalar-prefetched indices + memory_space=pl.ANY DMA gather)
        # to avoid materializing the gathered copies in HBM.
        u = jnp.take(self.user_emb, users, axis=1)  # (D, B) bf16
        v = jnp.take(self.item_emb, items, axis=1)  # (D, B) bf16
        return mf_scores(u, v)


if __name__ == "__main__":
    model = BaseTrainingModelJAX(num_users=64, num_items=128, dim=128)

    key = jax.random.PRNGKey(0)
    ku, ki = jax.random.split(key)

    # Moderate batch (not a multiple of the tile) to exercise tiling + padding.
    B = 2500
    users = jax.random.randint(ku, (B,), 0, 64, dtype=jnp.int32)
    items = jax.random.randint(ki, (B,), 0, 128, dtype=jnp.int32)

    scores = model.forward(users, items)
    jax.block_until_ready(scores)

    # Pure-JAX reference.
    uref = jnp.take(model.user_emb, users, axis=1).astype(jnp.float32)
    vref = jnp.take(model.item_emb, items, axis=1).astype(jnp.float32)
    ref = jnp.sum(uref * vref, axis=0)
    assert scores.shape == (B,), scores.shape
    assert jnp.allclose(scores, ref, atol=2e-3, rtol=2e-3), "mismatch vs reference (large batch)"

    # Tiny-batch path (single padded tile) should also be exact.
    Bs = 8
    users_s = users[:Bs]
    items_s = items[:Bs]
    scores_s = model.forward(users_s, items_s)
    jax.block_until_ready(scores_s)
    ref_s = ref[:Bs]
    assert scores_s.shape == (Bs,)
    assert jnp.allclose(scores_s, ref_s, atol=2e-3, rtol=2e-3), "mismatch vs reference (tiny batch)"

    print("KERNEL_OK")
</pallas_src>

<mosaic_0001>
module attributes {stable_mosaic.version = 11 : i64} {
  func.func @_dot_score_kernel(%arg0: i32, %arg1: memref<128x1024xbf16, #tpu.memory_space<vmem>>, %arg2: memref<128x1024xbf16, #tpu.memory_space<vmem>>, %arg3: memref<1x1024xf32, #tpu.memory_space<vmem>>) attributes {dimension_semantics = [#tpu.dimension_semantics<parallel>], iteration_bounds = array<i64: 3>, scalar_prefetch = 0 : i64, scratch_operands = 0 : i64, tpu.core_type = #tpu.core_type<tc>, window_params = [{transform_indices = @transform_0, window_bounds = array<i64: 128, 1024>}, {transform_indices = @transform_1, window_bounds = array<i64: 128, 1024>}, {transform_indices = @transform_2, window_bounds = array<i64: 1, 1024>}]} {
    %c0 = arith.constant 0 : index
    %c0_0 = arith.constant 0 : index
    %0 = vector.load %arg1[%c0, %c0_0] : memref<128x1024xbf16, #tpu.memory_space<vmem>>, vector<128x1024xbf16>
    %1 = arith.extf %0 : vector<128x1024xbf16> to vector<128x1024xf32>
    %c0_1 = arith.constant 0 : index
    %c0_2 = arith.constant 0 : index
    %2 = vector.load %arg2[%c0_1, %c0_2] : memref<128x1024xbf16, #tpu.memory_space<vmem>>, vector<128x1024xbf16>
    %3 = arith.extf %2 : vector<128x1024xbf16> to vector<128x1024xf32>
    %4 = arith.mulf %1, %3 : vector<128x1024xf32>
    %cst = arith.constant dense<0.000000e+00> : vector<1024xf32>
    %5 = vector.multi_reduction <add>, %4, %cst [0] : vector<128x1024xf32> to vector<1024xf32>
    %6 = vector.shape_cast %5 : vector<1024xf32> to vector<1x1024xf32>
    %c0_3 = arith.constant 0 : index
    %c0_4 = arith.constant 0 : index
    %7 = vector.load %arg3[%c0_3, %c0_4] : memref<1x1024xf32, #tpu.memory_space<vmem>>, vector<1x1024xf32>
    tpu.vector_store %arg3[%c0_3, %c0_4], %6 {strides = array<i32>} : memref<1x1024xf32, #tpu.memory_space<vmem>>, vector<1x1024xf32>,
    return
  }
  func.func @transform_0(%arg0: i32) -> (i32, i32) {
    %c0_i32 = arith.constant 0 : i32
    %c0_i32_0 = arith.constant 0 : i32
    return %c0_i32, %arg0 : i32, i32
  }
  func.func @transform_1(%arg0: i32) -> (i32, i32) {
    %c0_i32 = arith.constant 0 : i32
    %c0_i32_0 = arith.constant 0 : i32
    return %c0_i32, %arg0 : i32, i32
  }
  func.func @transform_2(%arg0: i32) -> (i32, i32) {
    %c0_i32 = arith.constant 0 : i32
    %c0_i32_0 = arith.constant 0 : i32
    return %c0_i32, %arg0 : i32, i32
  }
}

</mosaic_0001>

<bundles_post_ra>
// kernel: tpu_custom_call.1
= control target key start
LH: loop header
LB: loop body
LE: loop exit
PB: predicated region body
PF: predicated region fallthrough
CT: control target
= control target key end

     0   :  { %s2961_s0 = inlined_call_operand.hbm [shape: bf16[128,3072], index: 0, kind: input, shape index: {}]   ;;  %s2962_s1 = inlined_call_operand.hbm [shape: bf16[128,3072], index: 1, kind: input, shape index: {}]   ;;  %s2963_s2 = inlined_call_operand.hbm [shape: f32[1,3072], index: 2, kind: output, shape index: {}]  }
   0x1   :  { %3116 = sst [smem:[#allocation92_spill]] %s2961_s0 }
   0x2   :  { %7 = vsyncpa [#allocation3], 0 }
   0x3   :  { %9 = vsyncpa [#allocation3 + $0x1], 0 }
   0x4   :  { %10 = vsyncpa [#allocation6], 0 }
   0x5   :  { %12 = vsyncpa [#allocation6 + $0x1], 0 }
   0x6   :  { %13 = vsyncpa [#allocation4], 0 }
   0x7   :  { %15 = vsyncpa [#allocation4 + $0x1], 0  ;;  %s1252_s9 = smov 0   ;;  %s1254_s10 = smov 0  }
   0x8   :  { %s1256_s11 = smov 0   ;;  %s1258_s12 = smov 0  }
   0x9 LB: > { %s1273_s13 = sadd.s32 4294967295, %s1232_s12   ;;  %s1029_s14 = sadd.s32 4294967294, %s1232_s12   ;;  %s1232_s12 = sphi %s1258_s12, %s3687_s12   ;;  %s1228_s11 = sphi %s1256_s11, %s3686_s11   ;;  %s1224_s10 = sphi %s1254_s10, %s3685_s10   ;;  %s1220_s9 = sphi %s1252_s9, %s3684_s9  }
   0xa   : > { %s1277_s15 = sadd.s32 1, %s1232_s12   ;;  %s28_s16 = sadd.s32 1, %s1228_s11 }
   0xb   : > { %s25_s17 = ssub.s32 %s1232_s12, %s1277_s15  ;;  %p35_p0 = scmp.ne.s32.totalorder %s1228_s11, %s1224_s10 }
   0xc   : > { %p26_p1 = scmp.eq.s32.totalorder %s25_s17, 0  ;;  %p36_p2 = scmp.eq.s32.totalorder %s1232_s12, 0 }
   0xd   : > { %p41_p3 = scmp.ne.s32.totalorder %s1224_s10, %s1220_s9  ;;  %p42_p4 = scmp.eq.s32.totalorder %s1273_s13, 0 }
   0xe   : > { %s1289_s18 = scalar_select %p26_p1, %s1228_s11, %s28_s16  }
   0xf   : > { %p1291_p5 = por %p36_p2, %p35_p0  ;;  %p1295_p6 = por %p42_p4, %p41_p3 }
  0x10   : > { %p91_p7 = scmp.eq.s32.totalorder %s1273_s13, 2  ;;  %p97_p8 = scmp.eq.s32.totalorder %s1029_s14, 2 }
  0x11   : > { %p1065_p9 = scmp.lt.s32.totalorder %s1232_s12, 3  ;;  %s1310_s23 = sand.u32 1, %s1228_s11  }
  0x12   : > { %p1301_p10 = por %p91_p7, %p35_p0  ;;  %p1305_p11 = por %p97_p8, %p41_p3 }
  0x13   : > { %s1046_s24 = sshll.u32 %s1232_s12, 5  ;;  %s1032_s25 = sshll.u32 %s1310_s23, 9 }
  0x14   : > { %s3121_s0 = sld [smem:[#allocation92_spill]]  ;;  %s121_s30 = scalar_lea.vmem [#allocation2], %s1032_s25 }
  0x15   : > { %s129_s3 = sshll.u32 %s121_s30, 4  ;;  %p1323_p12 = pnand %p1065_p9, %p1291_p5  ;;  %s130_s3 = int_to_ptr.vmem [resolvable:$true] %s129_s3 }
  0x16   : > { %p1038_p13 = scmp.ge.s32.totalorder %s1232_s12, 1  ;;  %s118_s5 = scalar_lea.sflag [#allocation3], %s1310_s23 }
  0x17   : > { %p1106_p1 = pneg %p1323_p12 }
  0x1a   : > { %s126_s28 = scalar_lea.hbm %s3121_s0, %s1046_s24  ;;  %s1109_s16 = scalar_lea.hbm %s3121_s0, 1536 }
  0x1b   : > { %s127_s29 = sshll.u32 %s126_s28, 4  ;;  %s128_s29 = int_to_ptr.hbm [resolvable:$true] %s127_s29 }
  0x1c   : > { %s1102_s6 = sshra.s32 %s128_s29, 4  ;;  %s1103_s6 = int_to_ptr.hbm [resolvable:$true] %s1102_s6 }
  0x1d   : > { %s1104_s7 = scalar_lea.hbm %s1103_s6, 512  ;;  %p1110_p4 = scmp.lt.s32.totalorder %s1103_s6, %s3121_s0 }
  0x1e   : > { %p1105_p0 = scmp.ne.s32.totalorder %s1103_s6, %s1104_s7  ;;  %p1111_p5 = scmp.lt.s32.totalorder %s1109_s16, %s1104_s7 }
  0x20   : > { %p1107_p2 = pnand %p1106_p1, %p1105_p0  ;;  %p1112_p7 = por %p1111_p5, %p1110_p4 }
  0x22   : > { %p1108_p3 = pneg %p1107_p2 }
  0x24   : > { %p1113_p8 = pnand %p1112_p7, %p1108_p3 }
  0x26   : > { %1116 = shalt.err (!%p1113_p8)
}
  0x27   : > { %s1234_s26 = smov 1536   ;;  %s1235_s27 = smov 512  }
  0x28   : > { %s1236_s28 = smov 32   ;;  %p159_p9 = scmp.lt.s32.totalorder %s1232_s12, 4 }
  0x29   : > { %1057 = dma.hbm_to_vmem [thread:$0]  (!%p1323_p12), %s128_s29, 8192, %s130_s3, %s118_s5, %s1234_s26, %s1235_s27, %s1236_s28  }
  0x2a   : > { %s148_s7 = scalar_lea.hbm %s2962_s1, %s1046_s24  ;;  %p1351_p0 = pnand %p1038_p13, %p159_p9 }
  0x2b   : > { %s149_s14 = sshll.u32 %s148_s7, 4  ;;  %s143_s16 = scalar_lea.vmem [#allocation5], %s1032_s25  ;;  %s150_s14 = int_to_ptr.hbm [resolvable:$true] %s149_s14 }
  0x2c   : > { %s151_s17 = sshll.u32 %s143_s16, 4  ;;  %s140_s19 = scalar_lea.sflag [#allocation6], %s1310_s23  ;;  %s152_s17 = int_to_ptr.vmem [resolvable:$true] %s151_s17 }
  0x2d   : > { %s1132_s0 = sshra.s32 %s150_s14, 4  ;;  %s1139_s5 = scalar_lea.hbm %s2962_s1, 1536  ;;  %s1133_s0 = int_to_ptr.hbm [resolvable:$true] %s1132_s0 }
  0x2e   : > { %s1134_s29 = scalar_lea.hbm %s1133_s0, 512  ;;  %p1140_p13 = scmp.lt.s32.totalorder %s1133_s0, %s2962_s1 }
  0x2f   : > { %p1135_p2 = scmp.ne.s32.totalorder %s1133_s0, %s1134_s29  ;;  %p1141_p5 = scmp.lt.s32.totalorder %s1139_s5, %s1134_s29 }
  0x31   : > { %p1137_p3 = pnand %p1135_p2, %p1106_p1  ;;  %p1142_p7 = por %p1141_p5, %p1140_p13 }
  0x33   : > { %p1138_p4 = pneg %p1137_p3 }
  0x35   : > { %p1143_p8 = pnand %p1142_p7, %p1138_p4 }
  0x37   : > { %1146 = shalt.err (!%p1143_p8)
}
  0x38   : > { %1060 = dma.hbm_to_vmem [thread:$0]  (!%p1323_p12), %s150_s14, 8192, %s152_s17, %s140_s19, %s1234_s26, %s1235_s27, %s1236_s28  }
  0x39   : > { %163 = sbr.rel (%p1351_p0) target bundleno = 330 (0x14a), region = 28 }
  0x3e   : > { %s1373_s23 = sand.u32 1, %s1224_s10  }
  0x3f   : > { %s1039_s25 = sshll.u32 %s1373_s23, 9  ;;  %s166_s7 = scalar_lea.sflag [#allocation3], %s1373_s23 }
  0x40   : > { %s1377_s0 = scalar_lea.vmem [#allocation2], %s1039_s25 }
  0x41   : > { %1207 = dma.done.wait (%p1295_p6), %s166_s7, 8192  }
  0x42   : > { %1209 = vsyncadd (%p1295_p6), %s166_s7, 4294959104  ;;  %s176_s4 = scalar_lea.sflag [#allocation6], %s1373_s23  ;;  %s1384_s26 = scalar_lea.vmem [#allocation5], %s1039_s25 }
  0x43   : > { %1211 = dma.done.wait (%p1295_p6), %s176_s4, 8192  }
  0x44   : > { %1213 = vsyncadd (%p1295_p6), %s176_s4, 4294959104  ;;  %v1391_v0 = vld [vmem:[%s1377_s0] sm:$0xff]  ;;  %v1394_v1 = vld [vmem:[%s1377_s0 + $0x8] sm:$0xff]  ;;  %s1041_s20 = sshll.u32 %s1373_s23, 3  ;;  %s1043_s27 = sshll.u32 %s1273_s13, 3  ;;  %vm904_vm0 = vcmask 1040384  }
  0x45   : > { %v1397_v2 = vld [vmem:[%s1377_s0 + $0x10] sm:$0xff]  ;;  %v1400_v3 = vld [vmem:[%s1377_s0 + $0x18] sm:$0xff]  ;;  %v1403_v4 = vld [vmem:[%s1377_s0 + $0x20] sm:$0xff]  ;;  %s931_s14 = scalar_lea.hbm %s2963_s2, %s1043_s27  ;;  %vm906_vm1 = vcmask 1042434   ;;  %vm908_vm2 = vcmask 1041408   ;;  %vm910_vm3 = vcmask 1044484  }
  0x46   : > { %v1406_v5 = vld [vmem:[%s1377_s0 + $0x28] sm:$0xff]  ;;  %v1413_v10 = vld [vmem:[%s1377_s0 + $0x30] sm:$0xff]  ;;  %v1416_v11 = vld [vmem:[%s1377_s0 + $0x38] sm:$0xff]  ;;  %s205_s13 = scalar_lea.vmem [#allocation7], %s1041_s20  ;;  %s935_s17 = sshll.u32 %s931_s14, 4  ;;  %vm912_vm4 = vcmask 1046534   ;;  %s936_s17 = int_to_ptr.hbm [resolvable:$true] %s935_s17 }
  0x47   : > { %v1419_v12 = vld [vmem:[%s1377_s0 + $0x40] sm:$0xff]  ;;  %v1426_v17 = vld [vmem:[%s1377_s0 + $0x48] sm:$0xff]  ;;  %v1429_v18 = vld [vmem:[%s1377_s0 + $0x50] sm:$0xff]  ;;  %s933_s16 = sshll.u32 %s205_s13, 4  ;;  %vm914_vm5 = vcmask 1045508   ;;  %vm916_vm6 = vcmask 1043456   ;;  %s934_s16 = int_to_ptr.vmem [resolvable:$true] %s933_s16 }
  0x48   : > { %v1432_v19 = vld [vmem:[%s1377_s0 + $0x58] sm:$0xff]  ;;  %v1439_v24 = vld [vmem:[%s1377_s0 + $0x60] sm:$0xff]  ;;  %v1442_v25 = vld [vmem:[%s1377_s0 + $0x68] sm:$0xff]  ;;  %s921_s19 = scalar_lea.sflag [#allocation4], %s1373_s23  ;;  %s1176_s29 = sshra.s32 %s936_s17, 4  ;;  %s1177_s29 = int_to_ptr.hbm [resolvable:$true] %s1176_s29 }
  0x49   : > { %v1449_v30 = vld [vmem:[%s1377_s0 + $0x70] sm:$0xff]  ;;  %v1452_v31 = vld [vmem:[%s1377_s0 + $0x78] sm:$0xff]  ;;  %v1459_v36 = vld [vmem:[%s1377_s0 + $0x80] sm:$0xff]  ;;  %s1178_s24 = scalar_lea.hbm %s1177_s29, 8  ;;  %s1182_s30 = scalar_lea.hbm %s2963_s2, 24 }
  0x4a   : > { %v1462_v37 = vld [vmem:[%s1377_s0 + $0x88] sm:$0xff]  ;;  %v1469_v42 = vld [vmem:[%s1377_s0 + $0x90] sm:$0xff]  ;;  %v1472_v43 = vld [vmem:[%s1377_s0 + $0x98] sm:$0xff]  ;;  %p1179_p6 = scmp.ne.s32.totalorder %s1177_s29, %s1178_s24  ;;  %p1183_p9 = scmp.lt.s32.totalorder %s1177_s29, %s2963_s2 }
  0x4b   : > { %v1479_v48 = vld [vmem:[%s1377_s0 + $0xa0] sm:$0xff]  ;;  %v1482_v49 = vld [vmem:[%s1377_s0 + $0xa8] sm:$0xff]  ;;  %v1489_v54 = vld [vmem:[%s1377_s0 + $0xb0] sm:$0xff]  ;;  %p1184_p0 = scmp.lt.s32.totalorder %s1182_s30, %s1178_s24 }
  0x4c   : > { %v1492_v55 = vld [vmem:[%s1377_s0 + $0xb8] sm:$0xff]  ;;  %v1499_v60 = vld [vmem:[%s1377_s0 + $0xc0] sm:$0xff]  ;;  %v1502_v61 = vld [vmem:[%s1377_s0 + $0xc8] sm:$0xff]  ;;  %p1180_p12 = pnand %p1179_p6, %p1301_p10 }
  0x4d   : > { %3124 = vst [vmem:[#allocation11_spill] sm:$0xff] %v1492_v55  ;;  %v1509_v57 = vld [vmem:[%s1377_s0 + $0xd0] sm:$0xff]  ;;  %v1512_v52 = vld [vmem:[%s1377_s0 + $0xd8] sm:$0xff]  ;;  %v1519_v63 = vld [vmem:[%s1377_s0 + $0xe0] sm:$0xff]  ;;  %p1185_p2 = por %p1184_p0, %p1183_p9 }
  0x4e   : > { %3125 = vst [vmem:[#allocation12_spill] sm:$0xff] %v1499_v60  ;;  %v1522_v50 = vld [vmem:[%s1377_s0 + $0xe8] sm:$0xff]  ;;  %v1529_v58 = vld [vmem:[%s1377_s0 + $0xf0] sm:$0xff]  ;;  %v1532_v46 = vld [vmem:[%s1377_s0 + $0xf8] sm:$0xff]  ;;  %p1181_p1 = pneg %p1180_p12 }
  0x4f   : > { %3126 = vst [vmem:[#allocation13_spill] sm:$0xff] %v1502_v61  ;;  %v1539_v56 = vld [vmem:[%s1377_s0 + $0x100] sm:$0xff]  ;;  %v1542_v44 = vld [vmem:[%s1377_s0 + $0x108] sm:$0xff]  ;;  %v1549_v62 = vld [vmem:[%s1377_s0 + $0x110] sm:$0xff] }
  0x50   : > { %3127 = vst [vmem:[#allocation14_spill] sm:$0xff] %v1509_v57  ;;  %v1552_v40 = vld [vmem:[%s1377_s0 + $0x118] sm:$0xff]  ;;  %v1559_v59 = vld [vmem:[%s1377_s0 + $0x120] sm:$0xff]  ;;  %v1562_v38 = vld [vmem:[%s1377_s0 + $0x128] sm:$0xff]  ;;  %p1186_p3 = pnand %p1185_p2, %p1181_p1 }
  0x51   : > { %3128 = vst [vmem:[#allocation15_spill] sm:$0xff] %v1512_v52  ;;  %v1569_v53 = vld [vmem:[%s1377_s0 + $0x130] sm:$0xff]  ;;  %v1572_v34 = vld [vmem:[%s1377_s0 + $0x138] sm:$0xff]  ;;  %v1579_v51 = vld [vmem:[%s1377_s0 + $0x140] sm:$0xff] }
  0x52   : > { %3129 = vst [vmem:[#allocation16_spill] sm:$0xff] %v1519_v63  ;;  %v1582_v32 = vld [vmem:[%s1377_s0 + $0x148] sm:$0xff]  ;;  %v1589_v47 = vld [vmem:[%s1377_s0 + $0x150] sm:$0xff]  ;;  %v1592_v28 = vld [vmem:[%s1377_s0 + $0x158] sm:$0xff] }
  0x53   : > { %3130 = vst [vmem:[#allocation17_spill] sm:$0xff] %v1522_v50  ;;  %v1599_v45 = vld [vmem:[%s1377_s0 + $0x160] sm:$0xff]  ;;  %v1602_v26 = vld [vmem:[%s1377_s0 + $0x168] sm:$0xff]  ;;  %v1609_v41 = vld [vmem:[%s1377_s0 + $0x170] sm:$0xff] }
  0x54   : > { %3131 = vst [vmem:[#allocation18_spill] sm:$0xff] %v1529_v58  ;;  %v1612_v22 = vld [vmem:[%s1377_s0 + $0x178] sm:$0xff]  ;;  %v1619_v39 = vld [vmem:[%s1377_s0 + $0x180] sm:$0xff]  ;;  %v1622_v20 = vld [vmem:[%s1377_s0 + $0x188] sm:$0xff] }
  0x55   : > { %3132 = vst [vmem:[#allocation19_spill] sm:$0xff] %v1532_v46  ;;  %v1629_v35 = vld [vmem:[%s1377_s0 + $0x190] sm:$0xff]  ;;  %v1632_v15 = vld [vmem:[%s1377_s0 + $0x198] sm:$0xff]  ;;  %v1639_v33 = vld [vmem:[%s1377_s0 + $0x1a0] sm:$0xff] }
  0x56   : > { %3133 = vst [vmem:[#allocation20_spill] sm:$0xff] %v1539_v56  ;;  %v1642_v13 = vld [vmem:[%s1377_s0 + $0x1a8] sm:$0xff]  ;;  %v1649_v29 = vld [vmem:[%s1377_s0 + $0x1b0] sm:$0xff]  ;;  %v1652_v8 = vld [vmem:[%s1377_s0 + $0x1b8] sm:$0xff] }
  0x57   : > { %3134 = vst [vmem:[#allocation21_spill] sm:$0xff] %v1542_v44  ;;  %v1659_v27 = vld [vmem:[%s1377_s0 + $0x1c0] sm:$0xff]  ;;  %v1662_v6 = vld [vmem:[%s1377_s0 + $0x1c8] sm:$0xff]  ;;  %v1669_v23 = vld [vmem:[%s1377_s0 + $0x1d0] sm:$0xff] }
  0x58   : > { %3135 = vst [vmem:[#allocation22_spill] sm:$0xff] %v1549_v62  ;;  %v1682_v21 = vld [vmem:[%s1377_s0 + $0x1e8] sm:$0xff]  ;;  %v1713_v16 = vld [vmem:[%s1384_s26 + $0x10] sm:$0xff]  ;;  %v1716_v7 = vld [vmem:[%s1384_s26 + $0x18] sm:$0xff] }
  0x59   : > { %3136 = vst [vmem:[#allocation23_spill] sm:$0xff] %v1552_v40  ;;  %v1706_v9 = vld [vmem:[%s1384_s26 + $0x8] sm:$0xff]  ;;  %v1812_v62 = vld [vmem:[%s1384_s26 + $0xb8] sm:$0xff]  ;;  %v1869_v40 = vld [vmem:[%s1384_s26 + $0x110] sm:$0xff] }
  0x5a   : > { %3137 = vst [vmem:[#allocation24_spill] sm:$0xff] %v1559_v59  ;;  %v1726_v14 = vld [vmem:[%s1384_s26 + $0x28] sm:$0xff]  ;;  %v1832_v58 = vld [vmem:[%s1384_s26 + $0xd8] sm:$0xff]  ;;  %v1879_v44 = vld [vmem:[%s1384_s26 + $0x120] sm:$0xff] }
  0x5b   : > { %3138 = vst [vmem:[#allocation25_spill] sm:$0xff] %v1562_v38  ;;  %v1802_v59 = vld [vmem:[%s1384_s26 + $0xa8] sm:$0xff]  ;;  %v1852_v57 = vld [vmem:[%s1384_s26 + $0xf8] sm:$0xff]  ;;  %v1859_v38 = vld [vmem:[%s1384_s26 + $0x100] sm:$0xff] }
  0x5c   : > { %3139 = vst [vmem:[#allocation26_spill] sm:$0xff] %v1569_v53  ;;  %v1792_v53 = vld [vmem:[%s1384_s26 + $0x98] sm:$0xff]  ;;  %v1822_v56 = vld [vmem:[%s1384_s26 + $0xc8] sm:$0xff]  ;;  %v1889_v46 = vld [vmem:[%s1384_s26 + $0x130] sm:$0xff] }
  0x5d   : > { %3140 = vst [vmem:[#allocation27_spill] sm:$0xff] %v1572_v34  ;;  %v1842_v63 = vld [vmem:[%s1384_s26 + $0xe8] sm:$0xff]  ;;  %v1849_v34 = vld [vmem:[%s1384_s26 + $0xf0] sm:$0xff]  ;;  %v1899_v50 = vld [vmem:[%s1384_s26 + $0x140] sm:$0xff] }
  0x5e   : > { %3141 = vst [vmem:[#allocation28_spill] sm:$0xff] %v1579_v51  ;;  %v1782_v51 = vld [vmem:[%s1384_s26 + $0x88] sm:$0xff]  ;;  %v1909_v52 = vld [vmem:[%s1384_s26 + $0x150] sm:$0xff]  ;;  %v1919_v61 = vld [vmem:[%s1384_s26 + $0x160] sm:$0xff] }
  0x5f   : > { %3142 = vst [vmem:[#allocation29_spill] sm:$0xff] %v1582_v32  ;;  %v1839_v32 = vld [vmem:[%s1384_s26 + $0xe0] sm:$0xff]  ;;  %v1862_v60 = vld [vmem:[%s1384_s26 + $0x108] sm:$0xff] }
  0x60   : > { %3143 = vst [vmem:[#allocation30_spill] sm:$0xff] %v1589_v47  ;;  %v1772_v47 = vld [vmem:[%s1384_s26 + $0x78] sm:$0xff]  ;;  %v1999_v55 = vld [vmem:[%s1384_s26 + $0x1e0] sm:$0xff] }
  0x61   : > { %3144 = vst [vmem:[#allocation31_spill] sm:$0xff] %v1592_v28  ;;  %v1829_v28 = vld [vmem:[%s1384_s26 + $0xd0] sm:$0xff] }
  0x62   : > { %3145 = vst [vmem:[#allocation32_spill] sm:$0xff] %v1599_v45  ;;  %v1762_v45 = vld [vmem:[%s1384_s26 + $0x68] sm:$0xff] }
  0x63   : > { %3146 = vst [vmem:[#allocation33_spill] sm:$0xff] %v1602_v26  ;;  %v1819_v26 = vld [vmem:[%s1384_s26 + $0xc0] sm:$0xff] }
  0x64   : > { %3147 = vst [vmem:[#allocation34_spill] sm:$0xff] %v1609_v41  ;;  %v1679_v41 = vld [vmem:[%s1377_s0 + $0x1e0] sm:$0xff] }
  0x65   : > { %3148 = vst [vmem:[#allocation35_spill] sm:$0xff] %v1612_v22  ;;  %v1723_v22 = vld [vmem:[%s1384_s26 + $0x20] sm:$0xff] }
  0x66   : > { %3149 = vst [vmem:[#allocation36_spill] sm:$0xff] %v1619_v39  ;;  %v1672_v39 = vld [vmem:[%s1377_s0 + $0x1d8] sm:$0xff] }
  0x67   : > { %3150 = vst [vmem:[#allocation37_spill] sm:$0xff] %v1622_v20  ;;  %v1692_v20 = vld [vmem:[%s1377_s0 + $0x1f8] sm:$0xff] }
  0x68   : > { %3151 = vst [vmem:[#allocation38_spill] sm:$0xff] %v1629_v35  ;;  %v1689_v35 = vld [vmem:[%s1377_s0 + $0x1f0] sm:$0xff] }
  0x69   : > { %3152 = vst [vmem:[#allocation39_spill] sm:$0xff] %v1632_v15  ;;  %v1729_v15 = vld [vmem:[%s1384_s26 + $0x30] sm:$0xff] }
  0x6a   : > { %3153 = vst [vmem:[#allocation40_spill] sm:$0xff] %v1639_v33  ;;  %v1752_v33 = vld [vmem:[%s1384_s26 + $0x58] sm:$0xff] }
  0x6b   : > { %3154 = vst [vmem:[#allocation41_spill] sm:$0xff] %v1642_v13  ;;  %v1739_v13 = vld [vmem:[%s1384_s26 + $0x40] sm:$0xff] }
  0x6c   : > { %3155 = vst [vmem:[#allocation42_spill] sm:$0xff] %v1649_v29  ;;  %v1703_v29 = vld [vmem:[%s1384_s26] sm:$0xff] }
  0x6d   : > { %3156 = vst [vmem:[#allocation43_spill] sm:$0xff] %v1652_v8  ;;  %v1749_v8 = vld [vmem:[%s1384_s26 + $0x50] sm:$0xff] }
  0x6e   : > { %3157 = vst [vmem:[#allocation44_spill] sm:$0xff] %v1659_v27  ;;  %v1809_v27 = vld [vmem:[%s1384_s26 + $0xb0] sm:$0xff] }
  0x6f   : > { %3158 = vst [vmem:[#allocation45_spill] sm:$0xff] %v1662_v6  ;;  %v1759_v6 = vld [vmem:[%s1384_s26 + $0x60] sm:$0xff] }
  0x70   : > { %3159 = vst [vmem:[#allocation46_spill] sm:$0xff] %v1669_v23  ;;  %v1769_v23 = vld [vmem:[%s1384_s26 + $0x70] sm:$0xff] }
  0x71   : > { %3160 = vst [vmem:[#allocation47_spill] sm:$0xff] %v1672_v39  ;;  %v1799_v39 = vld [vmem:[%s1384_s26 + $0xa0] sm:$0xff] }
  0x72   : > { %3161 = vst [vmem:[#allocation48_spill] sm:$0xff] %v1679_v41  ;;  %v1779_v41 = vld [vmem:[%s1384_s26 + $0x80] sm:$0xff] }
  0x73   : > { %3162 = vst [vmem:[#allocation49_spill] sm:$0xff] %v1682_v21  ;;  %v1732_v21 = vld [vmem:[%s1384_s26 + $0x38] sm:$0xff] }
  0x74   : > { %3163 = vst [vmem:[#allocation50_spill] sm:$0xff] %v1689_v35  ;;  %v1789_v35 = vld [vmem:[%s1384_s26 + $0x90] sm:$0xff] }
  0x75   : > { %3164 = vst [vmem:[#allocation51_spill] sm:$0xff] %v1692_v20  ;;  %v1742_v20 = vld [vmem:[%s1384_s26 + $0x48] sm:$0xff] }
  0x76   : > { %3165 = vst [vmem:[#allocation52_spill] sm:$0xff] %v1809_v27  ;;  %v2009_v27 = vld [vmem:[%s1384_s26 + $0x1f0] sm:$0xff] }
  0x77   : > { %3166 = vst [vmem:[#allocation53_spill] sm:$0xff] %v1812_v62  ;;  %v1929_v62 = vld [vmem:[%s1384_s26 + $0x170] sm:$0xff] }
  0x78   : > { %3167 = vst [vmem:[#allocation54_spill] sm:$0xff] %v1819_v26  ;;  %v1872_v26 = vld [vmem:[%s1384_s26 + $0x118] sm:$0xff] }
  0x79   : > { %3168 = vst [vmem:[#allocation55_spill] sm:$0xff] %v1822_v56  ;;  %v1939_v56 = vld [vmem:[%s1384_s26 + $0x180] sm:$0xff] }
  0x7a   : > { %3169 = vst [vmem:[#allocation56_spill] sm:$0xff] %v1829_v28  ;;  %v1882_v28 = vld [vmem:[%s1384_s26 + $0x128] sm:$0xff] }
  0x7b   : > { %3170 = vst [vmem:[#allocation57_spill] sm:$0xff] %v1832_v58  ;;  %v1949_v58 = vld [vmem:[%s1384_s26 + $0x190] sm:$0xff] }
  0x7c   : > { %3171 = vst [vmem:[#allocation58_spill] sm:$0xff] %v1839_v32  ;;  %v1892_v32 = vld [vmem:[%s1384_s26 + $0x138] sm:$0xff] }
  0x7d   : > { %3172 = vst [vmem:[#allocation59_spill] sm:$0xff] %v1842_v63  ;;  %v1959_v63 = vld [vmem:[%s1384_s26 + $0x1a0] sm:$0xff] }
  0x7e   : > { %3173 = vst [vmem:[#allocation60_spill] sm:$0xff] %v1849_v34  ;;  %v1902_v34 = vld [vmem:[%s1384_s26 + $0x148] sm:$0xff] }
  0x7f   : > { %3174 = vst [vmem:[#allocation61_spill] sm:$0xff] %v1852_v57  ;;  %v1969_v57 = vld [vmem:[%s1384_s26 + $0x1b0] sm:$0xff] }
  0x80   : > { %3175 = vst [vmem:[#allocation62_spill] sm:$0xff] %v1859_v38  ;;  %v1912_v38 = vld [vmem:[%s1384_s26 + $0x158] sm:$0xff] }
  0x81   : > { %3176 = vst [vmem:[#allocation63_spill] sm:$0xff] %v1862_v60  ;;  %v1979_v60 = vld [vmem:[%s1384_s26 + $0x1c0] sm:$0xff] }
  0x82   : > { %3177 = vst [vmem:[#allocation64_spill] sm:$0xff] %v1869_v40  ;;  %v1922_v40 = vld [vmem:[%s1384_s26 + $0x168] sm:$0xff] }
  0x83   : > { %3178 = vst [vmem:[#allocation65_spill] sm:$0xff] %v1872_v26  ;;  %v1989_v26 = vld [vmem:[%s1384_s26 + $0x1d0] sm:$0xff] }
  0x84   : > { %3179 = vst [vmem:[#allocation66_spill] sm:$0xff] %v1879_v44  ;;  %v1932_v44 = vld [vmem:[%s1384_s26 + $0x178] sm:$0xff] }
  0x85   : > { %3180 = vst [vmem:[#allocation67_spill] sm:$0xff] %v1882_v28  ;;  %v2002_v28 = vld [vmem:[%s1384_s26 + $0x1e8] sm:$0xff] }
  0x86   : > { %3181 = vst [vmem:[#allocation68_spill] sm:$0xff] %v1889_v46  ;;  %v1942_v46 = vld [vmem:[%s1384_s26 + $0x188] sm:$0xff] }
  0x87   : > { %3182 = vst [vmem:[#allocation69_spill] sm:$0xff] %v1892_v32  ;;  %v3204_v32 = vunpack.c.l.bf16 %v1394_v1 }
  0x88   : > { %3183 = vst [vmem:[#allocation70_spill] sm:$0xff] %v1899_v50  ;;  %v1952_v50 = vld [vmem:[%s1384_s26 + $0x198] sm:$0xff] }
  0x89   : > { %3184 = vst [vmem:[#allocation71_spill] sm:$0xff] %v1902_v34  ;;  %v3207_v34 = vunpack.c.h.bf16 %v1706_v9 }
  0x8a   : > { %3185 = vst [vmem:[#allocation72_spill] sm:$0xff] %v1909_v52  ;;  %v1962_v52 = vld [vmem:[%s1384_s26 + $0x1a8] sm:$0xff] }
  0x8b   : > { %3186 = vst [vmem:[#allocation73_spill] sm:$0xff] %v1912_v38 }
  0x8c   : > { %3187 = vst [vmem:[#allocation74_spill] sm:$0xff] %v1919_v61  ;;  %v1972_v61 = vld [vmem:[%s1384_s26 + $0x1b8] sm:$0xff] }
  0x8d   : > { %3188 = vst [vmem:[#allocation75_spill] sm:$0xff] %v1922_v40  ;;  %v2012_v40 = vld [vmem:[%s1384_s26 + $0x1f8] sm:$0xff] }
  0x8e   : > { %3189 = vst [vmem:[#allocation76_spill] sm:$0xff] %v1929_v62  ;;  %v1982_v62 = vld [vmem:[%s1384_s26 + $0x1c8] sm:$0xff] }
  0x8f   : > { %3190 = vst [vmem:[#allocation77_spill] sm:$0xff] %v1932_v44  ;;  %v3206_v44 = vunpack.c.h.bf16 %v1394_v1  ;;  %v3213_v1 = vunpack.c.l.bf16 %v1716_v7 }
  0x90   : > { %3191 = vst [vmem:[#allocation78_spill] sm:$0xff] %v1939_v56  ;;  %v1992_v56 = vld [vmem:[%s1384_s26 + $0x1d8] sm:$0xff] }
  0x91   : > { %3192 = vst [vmem:[#allocation79_spill] sm:$0xff] %v1942_v46  ;;  %v3203_v46 = vunpack.c.h.bf16 %v1703_v29 }
  0x92   : > { %3193 = vst [vmem:[#allocation80_spill] sm:$0xff] %v1949_v58  ;;  %v3201_v58 = vunpack.c.l.bf16 %v1703_v29  ;;  %v3210_v29 = vunpack.c.h.bf16 %v1397_v2 }
  0x93   : > { %3194 = vst [vmem:[#allocation81_spill] sm:$0xff] %v1952_v50  ;;  %v3200_v50 = vunpack.c.l.bf16 %v1391_v0 }
  0x94   : > { %3195 = vst [vmem:[#allocation82_spill] sm:$0xff] %v1962_v52  ;;  %v3205_v52 = vunpack.c.l.bf16 %v1706_v9  ;;  %v3214_v9 = vunpack.c.h.bf16 %v1400_v3 }
  0x95   : > { %3196 = vst [vmem:[#allocation83_spill] sm:$0xff] %v1969_v57  ;;  %v3202_v57 = vunpack.c.h.bf16 %v1391_v0  ;;  %v3209_v0 = vunpack.c.l.bf16 %v1713_v16 }
  0x96   : > { %3197 = vst [vmem:[#allocation84_spill] sm:$0xff] %v1972_v61  ;;  %v2046_v38 = vmul.f32 %v3205_v52, %v3204_v32  ;;  %v3212_v32 = vunpack.c.l.bf16 %v1400_v3  ;;  %v3221_v3 = vunpack.c.l.bf16 %v1726_v14 }
  0x97   : > { %3198 = vst [vmem:[#allocation85_spill] sm:$0xff] %v1992_v56  ;;  %v2034_v56 = vmul.f32 %v3201_v58, %v3200_v50  ;;  %v2040_v61 = vmul.f32 %v3203_v46, %v3202_v57  ;;  %v3208_v50 = vunpack.c.l.bf16 %v1397_v2  ;;  %v3211_v46 = vunpack.c.h.bf16 %v1713_v16 }
  0x98   : > { %3199 = vst [vmem:[#allocation86_spill] sm:$0xff] %v2012_v40  ;;  %v2052_v40 = vmul.f32 %v3207_v34, %v3206_v44  ;;  %v2070_v52 = vmul.f32 %v3213_v1, %v3212_v32  ;;  %v3215_v34 = vunpack.c.h.bf16 %v1716_v7  ;;  %v3217_v2 = vunpack.c.l.bf16 %v1723_v22 }
  0x99   : > { %v2058_v58 = vmul.f32 %v3209_v0, %v3208_v50  ;;  %v2064_v57 = vmul.f32 %v3211_v46, %v3210_v29  ;;  %v3216_v50 = vunpack.c.l.bf16 %v1403_v4  ;;  %v3218_v16 = vunpack.c.h.bf16 %v1403_v4 }
  0x9a   : > { %v2076_v44 = vmul.f32 %v3215_v34, %v3214_v9  ;;  %v3219_v29 = vunpack.c.h.bf16 %v1723_v22  ;;  %v3220_v32 = vunpack.c.l.bf16 %v1406_v5  ;;  %v3222_v7 = vunpack.c.h.bf16 %v1406_v5 }
  0x9b   : > { %v2082_v0 = vmul.f32 %v3217_v2, %v3216_v50  ;;  %v3223_v9 = vunpack.c.h.bf16 %v1726_v14  ;;  %v3224_v50 = vunpack.c.l.bf16 %v1413_v10  ;;  %v3225_v4 = vunpack.c.l.bf16 %v1729_v15 }
  0x9c   : > { %v2088_v46 = vmul.f32 %v3219_v29, %v3218_v16  ;;  %v2094_v1 = vmul.f32 %v3221_v3, %v3220_v32  ;;  %v3226_v22 = vunpack.c.h.bf16 %v1413_v10  ;;  %v3227_v16 = vunpack.c.h.bf16 %v1729_v15 }
  0x9d   : > { %v2100_v34 = vmul.f32 %v3223_v9, %v3222_v7  ;;  %v2106_v2 = vmul.f32 %v3225_v4, %v3224_v50  ;;  %v3228_v32 = vunpack.c.l.bf16 %v1416_v11  ;;  %v3229_v5 = vunpack.c.l.bf16 %v1732_v21 }
  0x9e   : > { %v2112_v29 = vmul.f32 %v3227_v16, %v3226_v22  ;;  %v3230_v14 = vunpack.c.h.bf16 %v1416_v11  ;;  %v3231_v7 = vunpack.c.h.bf16 %v1732_v21  ;;  %v3232_v50 = vunpack.c.l.bf16 %v1419_v12 }
  0x9f   : > { %v2118_v3 = vmul.f32 %v3229_v5, %v3228_v32  ;;  %v3233_v10 = vunpack.c.l.bf16 %v1739_v13  ;;  %v3234_v15 = vunpack.c.h.bf16 %v1419_v12  ;;  %v3235_v22 = vunpack.c.h.bf16 %v1739_v13 }
  0xa0   : > { %v2124_v9 = vmul.f32 %v3231_v7, %v3230_v14  ;;  %v3236_v32 = vunpack.c.l.bf16 %v1426_v17  ;;  %v3237_v11 = vunpack.c.l.bf16 %v1742_v20  ;;  %v3238_v21 = vunpack.c.h.bf16 %v1426_v17 }
  0xa1   : > { %v2130_v4 = vmul.f32 %v3233_v10, %v3232_v50  ;;  %v2136_v16 = vmul.f32 %v3235_v22, %v3234_v15  ;;  %v3239_v14 = vunpack.c.h.bf16 %v1742_v20  ;;  %v3240_v50 = vunpack.c.l.bf16 %v1429_v18 }
  0xa2   : > { %v2142_v5 = vmul.f32 %v3237_v11, %v3236_v32  ;;  %v3241_v12 = vunpack.c.l.bf16 %v1749_v8  ;;  %v3242_v13 = vunpack.c.h.bf16 %v1429_v18  ;;  %v3243_v15 = vunpack.c.h.bf16 %v1749_v8 }
  0xa3   : > { %v2148_v7 = vmul.f32 %v3239_v14, %v3238_v21  ;;  %v3244_v32 = vunpack.c.l.bf16 %v1432_v19  ;;  %v3245_v17 = vunpack.c.l.bf16 %v1752_v33  ;;  %v3246_v20 = vunpack.c.h.bf16 %v1432_v19 }
  0xa4   : > { %v2154_v10 = vmul.f32 %v3241_v12, %v3240_v50  ;;  %v2160_v22 = vmul.f32 %v3243_v15, %v3242_v13  ;;  %v3247_v21 = vunpack.c.h.bf16 %v1752_v33  ;;  %v3248_v50 = vunpack.c.l.bf16 %v1439_v24 }
  0xa5   : > { %v2166_v11 = vmul.f32 %v3245_v17, %v3244_v32  ;;  %v3249_v18 = vunpack.c.l.bf16 %v1759_v6  ;;  %v3250_v8 = vunpack.c.h.bf16 %v1439_v24  ;;  %v3251_v13 = vunpack.c.h.bf16 %v1759_v6 }
  0xa6   : > { %v2172_v14 = vmul.f32 %v3247_v21, %v3246_v20  ;;  %v3252_v32 = vunpack.c.l.bf16 %v1442_v25  ;;  %v3253_v19 = vunpack.c.l.bf16 %v1762_v45  ;;  %v3254_v33 = vunpack.c.h.bf16 %v1442_v25 }
  0xa7   : > { %v2178_v12 = vmul.f32 %v3249_v18, %v3248_v50  ;;  %v2184_v15 = vmul.f32 %v3251_v13, %v3250_v8  ;;  %v3255_v20 = vunpack.c.h.bf16 %v1762_v45  ;;  %v3256_v50 = vunpack.c.l.bf16 %v1449_v30 }
  0xa8   : > { %v2190_v17 = vmul.f32 %v3253_v19, %v3252_v32  ;;  %v3257_v24 = vunpack.c.l.bf16 %v1769_v23  ;;  %v3258_v6 = vunpack.c.h.bf16 %v1449_v30  ;;  %v3259_v8 = vunpack.c.h.bf16 %v1769_v23 }
  0xa9   : > { %v2196_v21 = vmul.f32 %v3255_v20, %v3254_v33  ;;  %v3260_v32 = vunpack.c.l.bf16 %v1452_v31  ;;  %v3261_v25 = vunpack.c.l.bf16 %v1772_v47  ;;  %v3262_v45 = vunpack.c.h.bf16 %v1452_v31 }
  0xaa   : > { %v2202_v18 = vmul.f32 %v3257_v24, %v3256_v50  ;;  %v2208_v13 = vmul.f32 %v3259_v8, %v3258_v6  ;;  %v3263_v33 = vunpack.c.h.bf16 %v1772_v47  ;;  %v3264_v50 = vunpack.c.l.bf16 %v1459_v36 }
  0xab   : > { %v2214_v19 = vmul.f32 %v3261_v25, %v3260_v32  ;;  %v3265_v30 = vunpack.c.l.bf16 %v1779_v41  ;;  %v3266_v23 = vunpack.c.h.bf16 %v1459_v36  ;;  %v3267_v6 = vunpack.c.h.bf16 %v1779_v41 }
  0xac   : > { %v2220_v20 = vmul.f32 %v3263_v33, %v3262_v45  ;;  %v3268_v32 = vunpack.c.l.bf16 %v1462_v37  ;;  %v3269_v31 = vunpack.c.l.bf16 %v1782_v51  ;;  %v3270_v47 = vunpack.c.h.bf16 %v1462_v37 }
  0xad   : > { %v2226_v24 = vmul.f32 %v3265_v30, %v3264_v50  ;;  %v2232_v8 = vmul.f32 %v3267_v6, %v3266_v23  ;;  %v3271_v45 = vunpack.c.h.bf16 %v1782_v51  ;;  %v3272_v50 = vunpack.c.l.bf16 %v1469_v42 }
  0xae   : > { %v2238_v25 = vmul.f32 %v3269_v31, %v3268_v32  ;;  %v3273_v36 = vunpack.c.l.bf16 %v1789_v35  ;;  %v3274_v41 = vunpack.c.h.bf16 %v1469_v42  ;;  %v3275_v23 = vunpack.c.h.bf16 %v1789_v35 }
  0xaf   : > { %v2244_v33 = vmul.f32 %v3271_v45, %v3270_v47  ;;  %v3276_v32 = vunpack.c.l.bf16 %v1472_v43  ;;  %v3277_v37 = vunpack.c.l.bf16 %v1792_v53  ;;  %v3278_v51 = vunpack.c.h.bf16 %v1472_v43 }
  0xb0   : > { %v2250_v30 = vmul.f32 %v3273_v36, %v3272_v50  ;;  %v2256_v6 = vmul.f32 %v3275_v23, %v3274_v41  ;;  %v3279_v47 = vunpack.c.h.bf16 %v1792_v53  ;;  %v3280_v50 = vunpack.c.l.bf16 %v1479_v48 }
  0xb1   : > { %v2262_v31 = vmul.f32 %v3277_v37, %v3276_v32  ;;  %v3281_v42 = vunpack.c.l.bf16 %v1799_v39  ;;  %v3283_v35 = vunpack.c.h.bf16 %v1479_v48  ;;  %v3284_v41 = vunpack.c.h.bf16 %v1799_v39 }
  0xb2   : > { %v2268_v45 = vmul.f32 %v3279_v47, %v3278_v51  ;;  %v3286_v32 = vunpack.c.l.bf16 %v1482_v49  ;;  %v3287_v43 = vunpack.c.l.bf16 %v1802_v59  ;;  %v3289_v53 = vunpack.c.h.bf16 %v1482_v49 }
  0xb3   : > { %v2274_v36 = vmul.f32 %v3281_v42, %v3280_v50  ;;  %v2280_v23 = vmul.f32 %v3284_v41, %v3283_v35  ;;  %v3290_v51 = vunpack.c.h.bf16 %v1802_v59  ;;  %v3292_v50 = vunpack.c.l.bf16 %v1489_v54  ;;  %v3293_v42 = vld [vmem:[#allocation52_spill] sm:$0xff] }
  0xb4   : > { %v2286_v37 = vmul.f32 %v3287_v43, %v3286_v32  ;;  %v3294_v48 = vunpack.c.l.bf16 %v3293_v42  ;;  %v3296_v39 = vunpack.c.h.bf16 %v1489_v54  ;;  %v3297_v35 = vunpack.c.h.bf16 %v3293_v42  ;;  %v3299_v32 = vld [vmem:[#allocation11_spill] sm:$0xff] }
  0xb5   : > { %3282 = vst [vmem:[#allocation87_spill] sm:$0xff] %v2274_v36  ;;  %v2292_v47 = vmul.f32 %v3290_v51, %v3289_v53  ;;  %v3300_v43 = vunpack.c.l.bf16 %v3299_v32  ;;  %v3304_v59 = vunpack.c.h.bf16 %v3299_v32 }
  0xb6   : > { %3285 = vst [vmem:[#allocation88_spill] sm:$0xff] %v2280_v23  ;;  %v2298_v36 = vmul.f32 %v3294_v48, %v3292_v50  ;;  %v2304_v41 = vmul.f32 %v3297_v35, %v3296_v39  ;;  %v3307_v50 = vld [vmem:[#allocation12_spill] sm:$0xff] }
  0xb7   : > { %3288 = vst [vmem:[#allocation89_spill] sm:$0xff] %v2286_v37  ;;  %v3301_v37 = vld [vmem:[#allocation53_spill] sm:$0xff]  ;;  %v3308_v48 = vunpack.c.l.bf16 %v3307_v50  ;;  %v3312_v42 = vunpack.c.h.bf16 %v3307_v50 }
  0xb8   : > { %3291 = vst [vmem:[#allocation90_spill] sm:$0xff] %v2292_v47  ;;  %v3302_v49 = vunpack.c.l.bf16 %v3301_v37  ;;  %v3305_v53 = vunpack.c.h.bf16 %v3301_v37 }
  0xb9   : > { %3295 = vst [vmem:[#allocation52_spill] sm:$0xff] %v2298_v36  ;;  %v3309_v36 = vld [vmem:[#allocation54_spill] sm:$0xff] }
  0xba   : > { %3298 = vst [vmem:[#allocation91_spill] sm:$0xff] %v2304_v41  ;;  %v2310_v23 = vmul.f32 %v3302_v49, %v3300_v43  ;;  %v2316_v51 = vmul.f32 %v3305_v53, %v3304_v59  ;;  %v3310_v54 = vunpack.c.l.bf16 %v3309_v36  ;;  %v3313_v39 = vunpack.c.h.bf16 %v3309_v36  ;;  %v3315_v43 = vld [vmem:[#allocation13_spill] sm:$0xff] }
  0xbb   : > { %v3316_v49 = vunpack.c.l.bf16 %v3315_v43  ;;  %v3320_v37 = vunpack.c.h.bf16 %v3315_v43 }
  0xbc   : > { %3303 = vst [vmem:[#allocation11_spill] sm:$0xff] %v2310_v23  ;;  %v2322_v47 = vmul.f32 %v3310_v54, %v3308_v48  ;;  %v2328_v35 = vmul.f32 %v3313_v39, %v3312_v42  ;;  %v3317_v23 = vld [vmem:[#allocation55_spill] sm:$0xff]  ;;  %v3323_v48 = vld [vmem:[#allocation14_spill] sm:$0xff] }
  0xbd   : > { %3306 = vst [vmem:[#allocation53_spill] sm:$0xff] %v2316_v51  ;;  %v3318_v32 = vunpack.c.l.bf16 %v3317_v23  ;;  %v3321_v59 = vunpack.c.h.bf16 %v3317_v23  ;;  %v3324_v54 = vunpack.c.l.bf16 %v3323_v48  ;;  %v3328_v36 = vunpack.c.h.bf16 %v3323_v48 }
  0xbe   : > { %3311 = vst [vmem:[#allocation12_spill] sm:$0xff] %v2322_v47  ;;  %v3325_v47 = vld [vmem:[#allocation56_spill] sm:$0xff] }
  0xbf   : > { %3314 = vst [vmem:[#allocation54_spill] sm:$0xff] %v2328_v35  ;;  %v2334_v41 = vmul.f32 %v3318_v32, %v3316_v49  ;;  %v2340_v53 = vmul.f32 %v3321_v59, %v3320_v37  ;;  %v3326_v50 = vunpack.c.l.bf16 %v3325_v47  ;;  %v3329_v42 = vunpack.c.h.bf16 %v3325_v47  ;;  %v3331_v49 = vld [vmem:[#allocation15_spill] sm:$0xff] }
  0xc0   : > { %v3332_v32 = vunpack.c.l.bf16 %v3331_v49  ;;  %v3336_v23 = vunpack.c.h.bf16 %v3331_v49 }
  0xc1   : > { %3319 = vst [vmem:[#allocation13_spill] sm:$0xff] %v2334_v41  ;;  %v2346_v51 = vmul.f32 %v3326_v50, %v3324_v54  ;;  %v2352_v39 = vmul.f32 %v3329_v42, %v3328_v36  ;;  %v3333_v41 = vld [vmem:[#allocation57_spill] sm:$0xff]  ;;  %v3339_v54 = vld [vmem:[#allocation16_spill] sm:$0xff] }
  0xc2   : > { %3322 = vst [vmem:[#allocation55_spill] sm:$0xff] %v2340_v53  ;;  %v3334_v43 = vunpack.c.l.bf16 %v3333_v41  ;;  %v3337_v37 = vunpack.c.h.bf16 %v3333_v41  ;;  %v3340_v50 = vunpack.c.l.bf16 %v3339_v54  ;;  %v3344_v47 = vunpack.c.h.bf16 %v3339_v54 }
  0xc3   : > { %3327 = vst [vmem:[#allocation14_spill] sm:$0xff] %v2346_v51  ;;  %v3341_v51 = vld [vmem:[#allocation58_spill] sm:$0xff] }
  0xc4   : > { %3330 = vst [vmem:[#allocation56_spill] sm:$0xff] %v2352_v39  ;;  %v2358_v35 = vmul.f32 %v3334_v43, %v3332_v32  ;;  %v2364_v59 = vmul.f32 %v3337_v37, %v3336_v23  ;;  %v3342_v48 = vunpack.c.l.bf16 %v3341_v51  ;;  %v3345_v36 = vunpack.c.h.bf16 %v3341_v51  ;;  %v3347_v32 = vld [vmem:[#allocation17_spill] sm:$0xff] }
  0xc5   : > { %v3348_v43 = vunpack.c.l.bf16 %v3347_v32  ;;  %v3352_v41 = vunpack.c.h.bf16 %v3347_v32 }
  0xc6   : > { %3335 = vst [vmem:[#allocation15_spill] sm:$0xff] %v2358_v35  ;;  %v2370_v53 = vmul.f32 %v3342_v48, %v3340_v50  ;;  %v2376_v42 = vmul.f32 %v3345_v36, %v3344_v47  ;;  %v3349_v35 = vld [vmem:[#allocation59_spill] sm:$0xff]  ;;  %v3355_v50 = vld [vmem:[#allocation18_spill] sm:$0xff] }
  0xc7   : > { %3338 = vst [vmem:[#allocation57_spill] sm:$0xff] %v2364_v59  ;;  %v3350_v49 = vunpack.c.l.bf16 %v3349_v35  ;;  %v3353_v23 = vunpack.c.h.bf16 %v3349_v35  ;;  %v3356_v48 = vunpack.c.l.bf16 %v3355_v50  ;;  %v3360_v51 = vunpack.c.h.bf16 %v3355_v50 }
  0xc8   : > { %3343 = vst [vmem:[#allocation16_spill] sm:$0xff] %v2370_v53  ;;  %v3357_v53 = vld [vmem:[#allocation60_spill] sm:$0xff] }
  0xc9   : > { %3346 = vst [vmem:[#allocation58_spill] sm:$0xff] %v2376_v42  ;;  %v2382_v39 = vmul.f32 %v3350_v49, %v3348_v43  ;;  %v2388_v37 = vmul.f32 %v3353_v23, %v3352_v41  ;;  %v3358_v54 = vunpack.c.l.bf16 %v3357_v53  ;;  %v3361_v47 = vunpack.c.h.bf16 %v3357_v53  ;;  %v3363_v43 = vld [vmem:[#allocation19_spill] sm:$0xff] }
  0xca   : > { %v3364_v49 = vunpack.c.l.bf16 %v3363_v43  ;;  %v3368_v35 = vunpack.c.h.bf16 %v3363_v43 }
  0xcb   : > { %3351 = vst [vmem:[#allocation17_spill] sm:$0xff] %v2382_v39  ;;  %v2394_v59 = vmul.f32 %v3358_v54, %v3356_v48  ;;  %v2400_v36 = vmul.f32 %v3361_v47, %v3360_v51  ;;  %v3365_v39 = vld [vmem:[#allocation61_spill] sm:$0xff]  ;;  %v3371_v48 = vld [vmem:[#allocation20_spill] sm:$0xff] }
  0xcc   : > { %3354 = vst [vmem:[#allocation59_spill] sm:$0xff] %v2388_v37  ;;  %v3366_v32 = vunpack.c.l.bf16 %v3365_v39  ;;  %v3369_v41 = vunpack.c.h.bf16 %v3365_v39  ;;  %v3372_v54 = vunpack.c.l.bf16 %v3371_v48  ;;  %v3376_v53 = vunpack.c.h.bf16 %v3371_v48 }
  0xcd   : > { %3359 = vst [vmem:[#allocation18_spill] sm:$0xff] %v2394_v59  ;;  %v3373_v59 = vld [vmem:[#allocation62_spill] sm:$0xff] }
  0xce   : > { %3362 = vst [vmem:[#allocation60_spill] sm:$0xff] %v2400_v36  ;;  %v2406_v42 = vmul.f32 %v3366_v32, %v3364_v49  ;;  %v2412_v23 = vmul.f32 %v3369_v41, %v3368_v35  ;;  %v3374_v50 = vunpack.c.l.bf16 %v3373_v59  ;;  %v3377_v51 = vunpack.c.h.bf16 %v3373_v59  ;;  %v3379_v49 = vld [vmem:[#allocation21_spill] sm:$0xff] }
  0xcf   : > { %v3380_v32 = vunpack.c.l.bf16 %v3379_v49  ;;  %v3384_v39 = vunpack.c.h.bf16 %v3379_v49 }
  0xd0   : > { %3367 = vst [vmem:[#allocation19_spill] sm:$0xff] %v2406_v42  ;;  %v2418_v37 = vmul.f32 %v3374_v50, %v3372_v54  ;;  %v2424_v47 = vmul.f32 %v3377_v51, %v3376_v53  ;;  %v3381_v42 = vld [vmem:[#allocation63_spill] sm:$0xff]  ;;  %v3387_v54 = vld [vmem:[#allocation22_spill] sm:$0xff] }
  0xd1   : > { %3370 = vst [vmem:[#allocation61_spill] sm:$0xff] %v2412_v23  ;;  %v3382_v43 = vunpack.c.l.bf16 %v3381_v42  ;;  %v3385_v35 = vunpack.c.h.bf16 %v3381_v42  ;;  %v3388_v50 = vunpack.c.l.bf16 %v3387_v54  ;;  %v3392_v59 = vunpack.c.h.bf16 %v3387_v54 }
  0xd2   : > { %3375 = vst [vmem:[#allocation20_spill] sm:$0xff] %v2418_v37  ;;  %v3389_v37 = vld [vmem:[#allocation64_spill] sm:$0xff] }
  0xd3   : > { %3378 = vst [vmem:[#allocation62_spill] sm:$0xff] %v2424_v47  ;;  %v2430_v36 = vmul.f32 %v3382_v43, %v3380_v32  ;;  %v2436_v41 = vmul.f32 %v3385_v35, %v3384_v39  ;;  %v3390_v48 = vunpack.c.l.bf16 %v3389_v37  ;;  %v3393_v53 = vunpack.c.h.bf16 %v3389_v37  ;;  %v3395_v32 = vld [vmem:[#allocation23_spill] sm:$0xff] }
  0xd4   : > { %v3396_v43 = vunpack.c.l.bf16 %v3395_v32  ;;  %v3400_v42 = vunpack.c.h.bf16 %v3395_v32 }
  0xd5   : > { %3383 = vst [vmem:[#allocation21_spill] sm:$0xff] %v2430_v36  ;;  %v2442_v23 = vmul.f32 %v3390_v48, %v3388_v50  ;;  %v2448_v51 = vmul.f32 %v3393_v53, %v3392_v59  ;;  %v3397_v36 = vld [vmem:[#allocation65_spill] sm:$0xff]  ;;  %v3403_v50 = vld [vmem:[#allocation24_spill] sm:$0xff] }
  0xd6   : > { %3386 = vst [vmem:[#allocation63_spill] sm:$0xff] %v2436_v41  ;;  %v3398_v49 = vunpack.c.l.bf16 %v3397_v36  ;;  %v3401_v39 = vunpack.c.h.bf16 %v3397_v36  ;;  %v3404_v48 = vunpack.c.l.bf16 %v3403_v50  ;;  %v3408_v37 = vunpack.c.h.bf16 %v3403_v50 }
  0xd7   : > { %3391 = vst [vmem:[#allocation22_spill] sm:$0xff] %v2442_v23  ;;  %v3405_v23 = vld [vmem:[#allocation66_spill] sm:$0xff] }
  0xd8   : > { %3394 = vst [vmem:[#allocation64_spill] sm:$0xff] %v2448_v51  ;;  %v2454_v47 = vmul.f32 %v3398_v49, %v3396_v43  ;;  %v2460_v35 = vmul.f32 %v3401_v39, %v3400_v42  ;;  %v3406_v54 = vunpack.c.l.bf16 %v3405_v23  ;;  %v3409_v59 = vunpack.c.h.bf16 %v3405_v23  ;;  %v3411_v43 = vld [vmem:[#allocation25_spill] sm:$0xff] }
  0xd9   : > { %v3412_v49 = vunpack.c.l.bf16 %v3411_v43  ;;  %v3416_v36 = vunpack.c.h.bf16 %v3411_v43 }
  0xda   : > { %3399 = vst [vmem:[#allocation23_spill] sm:$0xff] %v2454_v47  ;;  %v2466_v41 = vmul.f32 %v3406_v54, %v3404_v48  ;;  %v2472_v53 = vmul.f32 %v3409_v59, %v3408_v37  ;;  %v3413_v47 = vld [vmem:[#allocation67_spill] sm:$0xff]  ;;  %v3419_v48 = vld [vmem:[#allocation26_spill] sm:$0xff] }
  0xdb   : > { %3402 = vst [vmem:[#allocation65_spill] sm:$0xff] %v2460_v35  ;;  %v3414_v32 = vunpack.c.l.bf16 %v3413_v47  ;;  %v3417_v42 = vunpack.c.h.bf16 %v3413_v47  ;;  %v3420_v54 = vunpack.c.l.bf16 %v3419_v48  ;;  %v3424_v23 = vunpack.c.h.bf16 %v3419_v48 }
  0xdc   : > { %3407 = vst [vmem:[#allocation24_spill] sm:$0xff] %v2466_v41  ;;  %v3421_v41 = vld [vmem:[#allocation68_spill] sm:$0xff] }
  0xdd   : > { %3410 = vst [vmem:[#allocation66_spill] sm:$0xff] %v2472_v53  ;;  %v2478_v51 = vmul.f32 %v3414_v32, %v3412_v49  ;;  %v2484_v39 = vmul.f32 %v3417_v42, %v3416_v36  ;;  %v3422_v50 = vunpack.c.l.bf16 %v3421_v41  ;;  %v3425_v37 = vunpack.c.h.bf16 %v3421_v41  ;;  %v3427_v49 = vld [vmem:[#allocation27_spill] sm:$0xff] }
  0xde   : > { %v3428_v32 = vunpack.c.l.bf16 %v3427_v49  ;;  %v3432_v47 = vunpack.c.h.bf16 %v3427_v49 }
  0xdf   : > { %3415 = vst [vmem:[#allocation25_spill] sm:$0xff] %v2478_v51  ;;  %v2490_v35 = vmul.f32 %v3422_v50, %v3420_v54  ;;  %v2496_v59 = vmul.f32 %v3425_v37, %v3424_v23  ;;  %v3429_v51 = vld [vmem:[#allocation69_spill] sm:$0xff]  ;;  %v3435_v54 = vld [vmem:[#allocation28_spill] sm:$0xff] }
  0xe0   : > { %3418 = vst [vmem:[#allocation67_spill] sm:$0xff] %v2484_v39  ;;  %v3430_v43 = vunpack.c.l.bf16 %v3429_v51  ;;  %v3433_v36 = vunpack.c.h.bf16 %v3429_v51  ;;  %v3436_v50 = vunpack.c.l.bf16 %v3435_v54  ;;  %v3440_v41 = vunpack.c.h.bf16 %v3435_v54 }
  0xe1   : > { %3423 = vst [vmem:[#allocation26_spill] sm:$0xff] %v2490_v35  ;;  %v3437_v35 = vld [vmem:[#allocation70_spill] sm:$0xff] }
  0xe2   : > { %3426 = vst [vmem:[#allocation68_spill] sm:$0xff] %v2496_v59  ;;  %v2502_v53 = vmul.f32 %v3430_v43, %v3428_v32  ;;  %v2508_v42 = vmul.f32 %v3433_v36, %v3432_v47  ;;  %v3438_v48 = vunpack.c.l.bf16 %v3437_v35  ;;  %v3441_v23 = vunpack.c.h.bf16 %v3437_v35  ;;  %v3443_v32 = vld [vmem:[#allocation29_spill] sm:$0xff] }
  0xe3   : > { %v3444_v43 = vunpack.c.l.bf16 %v3443_v32  ;;  %v3448_v51 = vunpack.c.h.bf16 %v3443_v32 }
  0xe4   : > { %3431 = vst [vmem:[#allocation27_spill] sm:$0xff] %v2502_v53  ;;  %v2514_v39 = vmul.f32 %v3438_v48, %v3436_v50  ;;  %v2520_v37 = vmul.f32 %v3441_v23, %v3440_v41  ;;  %v3445_v53 = vld [vmem:[#allocation71_spill] sm:$0xff]  ;;  %v3451_v50 = vld [vmem:[#allocation30_spill] sm:$0xff] }
  0xe5   : > { %3434 = vst [vmem:[#allocation69_spill] sm:$0xff] %v2508_v42  ;;  %v3446_v49 = vunpack.c.l.bf16 %v3445_v53  ;;  %v3449_v47 = vunpack.c.h.bf16 %v3445_v53  ;;  %v3452_v48 = vunpack.c.l.bf16 %v3451_v50  ;;  %v3456_v35 = vunpack.c.h.bf16 %v3451_v50 }
  0xe6   : > { %3439 = vst [vmem:[#allocation28_spill] sm:$0xff] %v2514_v39  ;;  %v3453_v39 = vld [vmem:[#allocation72_spill] sm:$0xff] }
  0xe7   : > { %3442 = vst [vmem:[#allocation70_spill] sm:$0xff] %v2520_v37  ;;  %v2526_v59 = vmul.f32 %v3446_v49, %v3444_v43  ;;  %v2532_v36 = vmul.f32 %v3449_v47, %v3448_v51  ;;  %v3454_v54 = vunpack.c.l.bf16 %v3453_v39  ;;  %v3457_v41 = vunpack.c.h.bf16 %v3453_v39  ;;  %v3459_v43 = vld [vmem:[#allocation31_spill] sm:$0xff] }
  0xe8   : > { %v3460_v49 = vunpack.c.l.bf16 %v3459_v43  ;;  %v3464_v53 = vunpack.c.h.bf16 %v3459_v43 }
  0xe9   : > { %3447 = vst [vmem:[#allocation29_spill] sm:$0xff] %v2526_v59  ;;  %v2538_v42 = vmul.f32 %v3454_v54, %v3452_v48  ;;  %v2544_v23 = vmul.f32 %v3457_v41, %v3456_v35  ;;  %v3461_v59 = vld [vmem:[#allocation73_spill] sm:$0xff]  ;;  %v3467_v48 = vld [vmem:[#allocation32_spill] sm:$0xff] }
  0xea   : > { %3450 = vst [vmem:[#allocation71_spill] sm:$0xff] %v2532_v36  ;;  %v3462_v32 = vunpack.c.l.bf16 %v3461_v59  ;;  %v3465_v51 = vunpack.c.h.bf16 %v3461_v59  ;;  %v3468_v54 = vunpack.c.l.bf16 %v3467_v48  ;;  %v3472_v39 = vunpack.c.h.bf16 %v3467_v48 }
  0xeb   : > { %3455 = vst [vmem:[#allocation30_spill] sm:$0xff] %v2538_v42  ;;  %v3469_v42 = vld [vmem:[#allocation74_spill] sm:$0xff] }
  0xec   : > { %3458 = vst [vmem:[#allocation72_spill] sm:$0xff] %v2544_v23  ;;  %v2550_v37 = vmul.f32 %v3462_v32, %v3460_v49  ;;  %v2556_v47 = vmul.f32 %v3465_v51, %v3464_v53  ;;  %v3470_v50 = vunpack.c.l.bf16 %v3469_v42  ;;  %v3473_v35 = vunpack.c.h.bf16 %v3469_v42  ;;  %v3475_v49 = vld [vmem:[#allocation33_spill] sm:$0xff] }
  0xed   : > { %v3476_v32 = vunpack.c.l.bf16 %v3475_v49  ;;  %v3480_v59 = vunpack.c.h.bf16 %v3475_v49 }
  0xee   : > { %3463 = vst [vmem:[#allocation31_spill] sm:$0xff] %v2550_v37  ;;  %v2562_v36 = vmul.f32 %v3470_v50, %v3468_v54  ;;  %v2568_v41 = vmul.f32 %v3473_v35, %v3472_v39  ;;  %v3477_v37 = vld [vmem:[#allocation75_spill] sm:$0xff]  ;;  %v3483_v54 = vld [vmem:[#allocation34_spill] sm:$0xff] }
  0xef   : > { %3466 = vst [vmem:[#allocation73_spill] sm:$0xff] %v2556_v47  ;;  %v3478_v43 = vunpack.c.l.bf16 %v3477_v37  ;;  %v3481_v53 = vunpack.c.h.bf16 %v3477_v37  ;;  %v3484_v50 = vunpack.c.l.bf16 %v3483_v54  ;;  %v3488_v42 = vunpack.c.h.bf16 %v3483_v54 }
  0xf0   : > { %3471 = vst [vmem:[#allocation32_spill] sm:$0xff] %v2562_v36  ;;  %v3485_v36 = vld [vmem:[#allocation76_spill] sm:$0xff] }
  0xf1   : > { %3474 = vst [vmem:[#allocation74_spill] sm:$0xff] %v2568_v41  ;;  %v2574_v23 = vmul.f32 %v3478_v43, %v3476_v32  ;;  %v2580_v51 = vmul.f32 %v3481_v53, %v3480_v59  ;;  %v3486_v48 = vunpack.c.l.bf16 %v3485_v36  ;;  %v3489_v39 = vunpack.c.h.bf16 %v3485_v36  ;;  %v3491_v32 = vld [vmem:[#allocation35_spill] sm:$0xff] }
  0xf2   : > { %v3492_v43 = vunpack.c.l.bf16 %v3491_v32  ;;  %v3496_v37 = vunpack.c.h.bf16 %v3491_v32 }
  0xf3   : > { %3479 = vst [vmem:[#allocation33_spill] sm:$0xff] %v2574_v23  ;;  %v2586_v47 = vmul.f32 %v3486_v48, %v3484_v50  ;;  %v2592_v35 = vmul.f32 %v3489_v39, %v3488_v42  ;;  %v3493_v23 = vld [vmem:[#allocation77_spill] sm:$0xff]  ;;  %v3499_v50 = vld [vmem:[#allocation36_spill] sm:$0xff] }
  0xf4   : > { %3482 = vst [vmem:[#allocation75_spill] sm:$0xff] %v2580_v51  ;;  %v3494_v49 = vunpack.c.l.bf16 %v3493_v23  ;;  %v3497_v59 = vunpack.c.h.bf16 %v3493_v23  ;;  %v3500_v48 = vunpack.c.l.bf16 %v3499_v50  ;;  %v3504_v36 = vunpack.c.h.bf16 %v3499_v50 }
  0xf5   : > { %3487 = vst [vmem:[#allocation34_spill] sm:$0xff] %v2586_v47  ;;  %v3501_v47 = vld [vmem:[#allocation78_spill] sm:$0xff] }
  0xf6   : > { %3490 = vst [vmem:[#allocation76_spill] sm:$0xff] %v2592_v35  ;;  %v2598_v41 = vmul.f32 %v3494_v49, %v3492_v43  ;;  %v2604_v53 = vmul.f32 %v3497_v59, %v3496_v37  ;;  %v3502_v54 = vunpack.c.l.bf16 %v3501_v47  ;;  %v3505_v42 = vunpack.c.h.bf16 %v3501_v47  ;;  %v3507_v43 = vld [vmem:[#allocation37_spill] sm:$0xff] }
  0xf7   : > { %v3508_v49 = vunpack.c.l.bf16 %v3507_v43  ;;  %v3512_v23 = vunpack.c.h.bf16 %v3507_v43 }
  0xf8   : > { %3495 = vst [vmem:[#allocation35_spill] sm:$0xff] %v2598_v41  ;;  %v2610_v51 = vmul.f32 %v3502_v54, %v3500_v48  ;;  %v2616_v39 = vmul.f32 %v3505_v42, %v3504_v36  ;;  %v3509_v41 = vld [vmem:[#allocation79_spill] sm:$0xff]  ;;  %v3514_v48 = vld [vmem:[#allocation38_spill] sm:$0xff] }
  0xf9   : > { %3498 = vst [vmem:[#allocation77_spill] sm:$0xff] %v2604_v53  ;;  %v3510_v32 = vunpack.c.l.bf16 %v3509_v41  ;;  %v3513_v37 = vunpack.c.h.bf16 %v3509_v41  ;;  %v3515_v54 = vunpack.c.l.bf16 %v3514_v48  ;;  %v3519_v47 = vunpack.c.h.bf16 %v3514_v48 }
  0xfa   : > { %3503 = vst [vmem:[#allocation36_spill] sm:$0xff] %v2610_v51  ;;  %v3516_v51 = vld [vmem:[#allocation80_spill] sm:$0xff]  ;;  %v3532_v48 = vunpack.c.l.bf16 %v1959_v63 }
  0xfb   : > { %3506 = vst [vmem:[#allocation78_spill] sm:$0xff] %v2616_v39  ;;  %v2622_v35 = vmul.f32 %v3510_v32, %v3508_v49  ;;  %v2628_v59 = vmul.f32 %v3513_v37, %v3512_v23  ;;  %v3517_v50 = vunpack.c.l.bf16 %v3516_v51  ;;  %v3520_v36 = vunpack.c.h.bf16 %v3516_v51  ;;  %v3522_v49 = vld [vmem:[#allocation39_spill] sm:$0xff] }
  0xfc   : > { %v3523_v32 = vunpack.c.l.bf16 %v3522_v49  ;;  %v3527_v41 = vunpack.c.h.bf16 %v3522_v49 }
  0xfd   : > { %3511 = vst [vmem:[#allocation37_spill] sm:$0xff] %v2622_v35  ;;  %v2634_v53 = vmul.f32 %v3517_v50, %v3515_v54  ;;  %v2640_v42 = vmul.f32 %v3520_v36, %v3519_v47  ;;  %v3524_v35 = vld [vmem:[#allocation81_spill] sm:$0xff]  ;;  %v3530_v54 = vld [vmem:[#allocation40_spill] sm:$0xff]  ;;  %v3535_v47 = vunpack.c.h.bf16 %v1959_v63 }
  0xfe   : > { %v3525_v43 = vunpack.c.l.bf16 %v3524_v35  ;;  %v3528_v23 = vunpack.c.h.bf16 %v3524_v35  ;;  %v3531_v50 = vunpack.c.l.bf16 %v3530_v54  ;;  %v3534_v51 = vunpack.c.h.bf16 %v3530_v54 }
  0xff   : > { %3518 = vst [vmem:[#allocation79_spill] sm:$0xff] %v2634_v53 }
 0x100   : > { %3521 = vst [vmem:[#allocation38_spill] sm:$0xff] %v2640_v42  ;;  %v2646_v39 = vmul.f32 %v3525_v43, %v3523_v32  ;;  %v2652_v37 = vmul.f32 %v3528_v23, %v3527_v41  ;;  %v2658_v53 = vmul.f32 %v3532_v48, %v3531_v50  ;;  %v2664_v36 = vmul.f32 %v3535_v47, %v3534_v51  ;;  %v3537_v32 = vld [vmem:[#allocation41_spill] sm:$0xff]  ;;  %v3544_v50 = vld [vmem:[#allocation42_spill] sm:$0xff] }
 0x101   : > { %v3538_v43 = vunpack.c.l.bf16 %v3537_v32  ;;  %v3542_v35 = vunpack.c.h.bf16 %v3537_v32  ;;  %v3545_v48 = vunpack.c.l.bf16 %v3544_v50  ;;  %v3549_v63 = vunpack.c.h.bf16 %v3544_v50 }
 0x102   : > { %3526 = vst [vmem:[#allocation80_spill] sm:$0xff] %v2646_v39  ;;  %v3539_v39 = vld [vmem:[#allocation82_spill] sm:$0xff]  ;;  %v3560_v50 = vunpack.c.l.bf16 %v1979_v60 }
 0x103   : > { %3529 = vst [vmem:[#allocation39_spill] sm:$0xff] %v2652_v37  ;;  %v3540_v49 = vunpack.c.l.bf16 %v3539_v39  ;;  %v3543_v41 = vunpack.c.h.bf16 %v3539_v39 }
 0x104   : > { %3533 = vst [vmem:[#allocation81_spill] sm:$0xff] %v2658_v53  ;;  %v3546_v53 = vld [vmem:[#allocation83_spill] sm:$0xff] }
 0x105   : > { %3536 = vst [vmem:[#allocation40_spill] sm:$0xff] %v2664_v36  ;;  %v2670_v42 = vmul.f32 %v3540_v49, %v3538_v43  ;;  %v2676_v23 = vmul.f32 %v3543_v41, %v3542_v35  ;;  %v3547_v54 = vunpack.c.l.bf16 %v3546_v53  ;;  %v3550_v51 = vunpack.c.h.bf16 %v3546_v53  ;;  %v3551_v43 = vld [vmem:[#allocation43_spill] sm:$0xff] }
 0x106   : > { %v3552_v49 = vunpack.c.l.bf16 %v3551_v43  ;;  %v3556_v39 = vunpack.c.h.bf16 %v3551_v43  ;;  %v3567_v43 = vunpack.c.l.bf16 %v1982_v62 }
 0x107   : > { %3541 = vst [vmem:[#allocation41_spill] sm:$0xff] %v2670_v42  ;;  %v2682_v37 = vmul.f32 %v3547_v54, %v3545_v48  ;;  %v2688_v47 = vmul.f32 %v3550_v51, %v3549_v63  ;;  %v3553_v42 = vld [vmem:[#allocation84_spill] sm:$0xff]  ;;  %v3563_v63 = vunpack.c.h.bf16 %v1979_v60 }
 0x108   : > { %v3554_v32 = vunpack.c.l.bf16 %v3553_v42  ;;  %v3557_v35 = vunpack.c.h.bf16 %v3553_v42  ;;  %v3558_v48 = vld [vmem:[#allocation44_spill] sm:$0xff] }
 0x109   : > { %3548 = vst [vmem:[#allocation82_spill] sm:$0xff] %v2682_v37  ;;  %v3559_v54 = vunpack.c.l.bf16 %v3558_v48  ;;  %v3562_v53 = vunpack.c.h.bf16 %v3558_v48  ;;  %v3573_v48 = vunpack.c.l.bf16 %v1989_v26 }
 0x10a   : > { %v2694_v36 = vmul.f32 %v3554_v32, %v3552_v49  ;;  %v2700_v41 = vmul.f32 %v3557_v35, %v3556_v39  ;;  %v3565_v49 = vld [vmem:[#allocation45_spill] sm:$0xff]  ;;  %v3570_v39 = vunpack.c.h.bf16 %v1982_v62 }
 0x10b   : > { %v2706_v37 = vmul.f32 %v3560_v50, %v3559_v54  ;;  %v2712_v51 = vmul.f32 %v3563_v63, %v3562_v53  ;;  %v3566_v32 = vunpack.c.l.bf16 %v3565_v49  ;;  %v3569_v42 = vunpack.c.h.bf16 %v3565_v49  ;;  %v3571_v54 = vld [vmem:[#allocation46_spill] sm:$0xff] }
 0x10c   : > { %3555 = vst [vmem:[#allocation42_spill] sm:$0xff] %v2694_v36  ;;  %v3572_v50 = vunpack.c.l.bf16 %v3571_v54  ;;  %v3575_v60 = vunpack.c.h.bf16 %v3571_v54  ;;  %v3576_v53 = vunpack.c.h.bf16 %v1989_v26  ;;  %v3586_v54 = vunpack.c.l.bf16 %v1999_v55 }
 0x10d   : > { %3561 = vst [vmem:[#allocation83_spill] sm:$0xff] %v2706_v37  ;;  %v2718_v36 = vmul.f32 %v3567_v43, %v3566_v32  ;;  %v2724_v35 = vmul.f32 %v3570_v39, %v3569_v42  ;;  %v3577_v32 = vld [vmem:[#allocation47_spill] sm:$0xff] }
 0x10e   : > { %3564 = vst [vmem:[#allocation43_spill] sm:$0xff] %v2712_v51  ;;  %v2730_v37 = vmul.f32 %v3573_v48, %v3572_v50  ;;  %v2736_v63 = vmul.f32 %v3576_v53, %v3575_v60  ;;  %v3578_v43 = vunpack.c.l.bf16 %v3577_v32  ;;  %v3582_v62 = vunpack.c.h.bf16 %v3577_v32  ;;  %v3584_v50 = vld [vmem:[#allocation48_spill] sm:$0xff] }
 0x10f   : > { %3568 = vst [vmem:[#allocation84_spill] sm:$0xff] %v2718_v36  ;;  %v3579_v36 = vld [vmem:[#allocation85_spill] sm:$0xff]  ;;  %v3585_v48 = vunpack.c.l.bf16 %v3584_v50  ;;  %v3588_v26 = vunpack.c.h.bf16 %v3584_v50  ;;  %v3589_v60 = vunpack.c.h.bf16 %v1999_v55  ;;  %v3593_v32 = vunpack.c.l.bf16 %v2002_v28 }
 0x110   : > { %3574 = vst [vmem:[#allocation44_spill] sm:$0xff] %v2730_v37  ;;  %v3580_v49 = vunpack.c.l.bf16 %v3579_v36  ;;  %v3583_v42 = vunpack.c.h.bf16 %v3579_v36  ;;  %v3599_v50 = vunpack.c.l.bf16 %v2009_v27 }
 0x111   : > { %v2754_v37 = vmul.f32 %v3586_v54, %v3585_v48  ;;  %v2760_v53 = vmul.f32 %v3589_v60, %v3588_v26  ;;  %v3597_v48 = vld [vmem:[#allocation50_spill] sm:$0xff]  ;;  %v3601_v26 = vunpack.c.h.bf16 %v2009_v27  ;;  %v742_v27 = vadd.f32 %v2088_v46, %v2040_v61 }
 0x112   : > { %v2742_v51 = vmul.f32 %v3580_v49, %v3578_v43  ;;  %v2748_v39 = vmul.f32 %v3583_v42, %v3582_v62  ;;  %v3591_v43 = vld [vmem:[#allocation49_spill] sm:$0xff]  ;;  %v3596_v62 = vunpack.c.h.bf16 %v2002_v28  ;;  %v3598_v54 = vunpack.c.l.bf16 %v3597_v48 }
 0x113   : > { %3587 = vst [vmem:[#allocation46_spill] sm:$0xff] %v2754_v37  ;;  %v3592_v49 = vunpack.c.l.bf16 %v3591_v43  ;;  %v3595_v36 = vunpack.c.h.bf16 %v3591_v43  ;;  %v3600_v55 = vunpack.c.h.bf16 %v3597_v48  ;;  %v763_v48 = vadd.f32 %v2094_v1, %v2046_v38 }
 0x114   : > { %3581 = vst [vmem:[#allocation45_spill] sm:$0xff] %v2742_v51  ;;  %v2778_v37 = vmul.f32 %v3599_v50, %v3598_v54  ;;  %v721_v54 = vadd.f32 %v2082_v0, %v2034_v56  ;;  %v784_v50 = vadd.f32 %v2100_v34, %v2052_v40  ;;  %v868_v56 = vadd.f32 %v2124_v9, %v2076_v44 }
 0x115   : > { %3590 = vst [vmem:[#allocation47_spill] sm:$0xff] %v2760_v53  ;;  %v2766_v51 = vmul.f32 %v3593_v32, %v3592_v49  ;;  %v2772_v42 = vmul.f32 %v3596_v62, %v3595_v36  ;;  %v2784_v60 = vmul.f32 %v3601_v26, %v3600_v55  ;;  %v3602_v49 = vld [vmem:[#allocation51_spill] sm:$0xff]  ;;  %v805_v55 = vadd.f32 %v2106_v2, %v2058_v58 }
 0x116   : > { %v3603_v32 = vunpack.c.l.bf16 %v3602_v49  ;;  %v3606_v28 = vunpack.c.h.bf16 %v3602_v49  ;;  %v847_v26 = vadd.f32 %v2118_v3, %v2070_v52  ;;  %v722_v61 = vadd.f32 %v721_v54, %v2130_v4  ;;  %v3613_v49 = vld [vmem:[#allocation91_spill] sm:$0xff]  ;;  %v3618_v54 = vld [vmem:[#allocation13_spill] sm:$0xff] }
 0x117   : > { %3594 = vst [vmem:[#allocation85_spill] sm:$0xff] %v2766_v51  ;;  %v3604_v51 = vld [vmem:[#allocation86_spill] sm:$0xff]  ;;  %v743_v0 = vadd.f32 %v742_v27, %v2136_v16  ;;  %v764_v38 = vadd.f32 %v763_v48, %v2142_v5  ;;  %v785_v40 = vadd.f32 %v784_v50, %v2148_v7  ;;  %v806_v46 = vadd.f32 %v805_v55, %v2154_v10  ;;  %v3619_v48 = vld [vmem:[#allocation55_spill] sm:$0xff] }
 0x118   : > { %v3605_v43 = vunpack.c.l.bf16 %v3604_v51  ;;  %v3607_v36 = vunpack.c.h.bf16 %v3604_v51  ;;  %v826_v51 = vadd.f32 %v2112_v29, %v2064_v57  ;;  %v848_v57 = vadd.f32 %v847_v26, %v2166_v11  ;;  %v3620_v55 = vld [vmem:[#allocation14_spill] sm:$0xff]  ;;  %v3621_v26 = vld [vmem:[#allocation56_spill] sm:$0xff] }
 0x119   : > { %v869_v1 = vadd.f32 %v868_v56, %v2172_v14  ;;  %v723_v52 = vadd.f32 %v722_v61, %v2178_v12  ;;  %v744_v44 = vadd.f32 %v743_v0, %v2184_v15  ;;  %v765_v34 = vadd.f32 %v764_v38, %v2190_v17  ;;  %v3608_v15 = vld [vmem:[#allocation87_spill] sm:$0xff]  ;;  %v3623_v38 = vld [vmem:[#allocation57_spill] sm:$0xff] }
 0x11a   : > { %v2790_v53 = vmul.f32 %v3605_v43, %v3603_v32  ;;  %v2796_v62 = vmul.f32 %v3607_v36, %v3606_v28  ;;  %v827_v58 = vadd.f32 %v826_v51, %v2160_v22  ;;  %v786_v2 = vadd.f32 %v785_v40, %v2196_v21  ;;  %v3609_v21 = vld [vmem:[#allocation88_spill] sm:$0xff]  ;;  %v3614_v32 = vld [vmem:[#allocation11_spill] sm:$0xff]  ;;  %v3615_v43 = vld [vmem:[#allocation53_spill] sm:$0xff] }
 0x11b   : > { %v807_v29 = vadd.f32 %v806_v46, %v2202_v18  ;;  %v849_v9 = vadd.f32 %v848_v57, %v2214_v19  ;;  %v870_v4 = vadd.f32 %v869_v1, %v2220_v20  ;;  %v724_v16 = vadd.f32 %v723_v52, %v2226_v24  ;;  %v3611_v20 = vld [vmem:[#allocation90_spill] sm:$0xff]  ;;  %v3616_v28 = vld [vmem:[#allocation12_spill] sm:$0xff]  ;;  %v3622_v61 = vld [vmem:[#allocation15_spill] sm:$0xff] }
 0x11c   : > { %v828_v3 = vadd.f32 %v827_v58, %v2208_v13  ;;  %v745_v5 = vadd.f32 %v744_v44, %v2232_v8  ;;  %v766_v7 = vadd.f32 %v765_v34, %v2238_v25  ;;  %v787_v10 = vadd.f32 %v786_v2, %v2244_v33  ;;  %v3610_v13 = vld [vmem:[#allocation89_spill] sm:$0xff]  ;;  %v3612_v8 = vld [vmem:[#allocation52_spill] sm:$0xff]  ;;  %v3617_v36 = vld [vmem:[#allocation54_spill] sm:$0xff] }
 0x11d   : > { %v808_v22 = vadd.f32 %v807_v29, %v2250_v30  ;;  %v850_v14 = vadd.f32 %v849_v9, %v2262_v31  ;;  %v871_v12 = vadd.f32 %v870_v4, %v2268_v45  ;;  %v725_v17 = vadd.f32 %v724_v16, %v3608_v15  ;;  %v3624_v46 = vld [vmem:[#allocation16_spill] sm:$0xff]  ;;  %v3625_v57 = vld [vmem:[#allocation58_spill] sm:$0xff]  ;;  %v3626_v52 = vld [vmem:[#allocation17_spill] sm:$0xff] }
 0x11e   : > { %v829_v11 = vadd.f32 %v828_v3, %v2256_v6  ;;  %v746_v18 = vadd.f32 %v745_v5, %v3609_v21  ;;  %v767_v19 = vadd.f32 %v766_v7, %v3610_v13  ;;  %v788_v24 = vadd.f32 %v787_v10, %v3611_v20  ;;  %v3627_v34 = vld [vmem:[#allocation59_spill] sm:$0xff]  ;;  %v3628_v29 = vld [vmem:[#allocation18_spill] sm:$0xff]  ;;  %v3629_v9 = vld [vmem:[#allocation60_spill] sm:$0xff] }
 0x11f   : > { %v809_v25 = vadd.f32 %v808_v22, %v3612_v8  ;;  %v851_v30 = vadd.f32 %v850_v14, %v3614_v32  ;;  %v872_v6 = vadd.f32 %v871_v12, %v3615_v43  ;;  %v726_v31 = vadd.f32 %v725_v17, %v3616_v28  ;;  %v3630_v16 = vld [vmem:[#allocation19_spill] sm:$0xff]  ;;  %v3631_v7 = vld [vmem:[#allocation61_spill] sm:$0xff]  ;;  %v3632_v22 = vld [vmem:[#allocation20_spill] sm:$0xff] }
 0x120   : > { %v830_v33 = vadd.f32 %v829_v11, %v3613_v49  ;;  %v747_v45 = vadd.f32 %v746_v18, %v3617_v36  ;;  %v768_v27 = vadd.f32 %v767_v19, %v3618_v54  ;;  %v789_v50 = vadd.f32 %v788_v24, %v3619_v48  ;;  %v3633_v14 = vld [vmem:[#allocation62_spill] sm:$0xff]  ;;  %v3634_v15 = vld [vmem:[#allocation21_spill] sm:$0xff]  ;;  %v3635_v21 = vld [vmem:[#allocation63_spill] sm:$0xff] }
 0x121   : > { %v810_v51 = vadd.f32 %v809_v25, %v3620_v55  ;;  %v852_v0 = vadd.f32 %v851_v30, %v3622_v61  ;;  %v873_v40 = vadd.f32 %v872_v6, %v3623_v38  ;;  %v727_v58 = vadd.f32 %v726_v31, %v3624_v46  ;;  %v3636_v13 = vld [vmem:[#allocation22_spill] sm:$0xff]  ;;  %v3637_v20 = vld [vmem:[#allocation64_spill] sm:$0xff]  ;;  %v3638_v8 = vld [vmem:[#allocation23_spill] sm:$0xff] }
 0x122   : > { %v831_v56 = vadd.f32 %v830_v33, %v3621_v26  ;;  %v748_v1 = vadd.f32 %v747_v45, %v3625_v57  ;;  %v769_v44 = vadd.f32 %v768_v27, %v3626_v52  ;;  %v790_v2 = vadd.f32 %v789_v50, %v3627_v34  ;;  %v3639_v49 = vld [vmem:[#allocation65_spill] sm:$0xff]  ;;  %v3640_v32 = vld [vmem:[#allocation24_spill] sm:$0xff]  ;;  %v3641_v43 = vld [vmem:[#allocation66_spill] sm:$0xff] }
 0x123   : > { %v811_v3 = vadd.f32 %v810_v51, %v3628_v29  ;;  %v853_v5 = vadd.f32 %v852_v0, %v3630_v16  ;;  %v874_v10 = vadd.f32 %v873_v40, %v3631_v7  ;;  %v728_v11 = vadd.f32 %v727_v58, %v3632_v22  ;;  %v3642_v28 = vld [vmem:[#allocation25_spill] sm:$0xff]  ;;  %v3643_v36 = vld [vmem:[#allocation67_spill] sm:$0xff]  ;;  %v3644_v54 = vld [vmem:[#allocation26_spill] sm:$0xff] }
 0x124   : > { %v832_v4 = vadd.f32 %v831_v56, %v3629_v9  ;;  %v749_v12 = vadd.f32 %v748_v1, %v3633_v14  ;;  %v770_v17 = vadd.f32 %v769_v44, %v3634_v15  ;;  %v791_v18 = vadd.f32 %v790_v2, %v3635_v21  ;;  %v3645_v48 = vld [vmem:[#allocation68_spill] sm:$0xff]  ;;  %v3646_v55 = vld [vmem:[#allocation27_spill] sm:$0xff]  ;;  %v3647_v26 = vld [vmem:[#allocation69_spill] sm:$0xff] }
 0x125   : > { %v812_v19 = vadd.f32 %v811_v3, %v3636_v13  ;;  %v854_v25 = vadd.f32 %v853_v5, %v3638_v8  ;;  %v875_v33 = vadd.f32 %v874_v10, %v3639_v49  ;;  %v729_v30 = vadd.f32 %v728_v11, %v3640_v32  ;;  %v3648_v61 = vld [vmem:[#allocation28_spill] sm:$0xff]  ;;  %v3649_v38 = vld [vmem:[#allocation70_spill] sm:$0xff]  ;;  %v3650_v46 = vld [vmem:[#allocation29_spill] sm:$0xff] }
 0x126   : > { %v833_v24 = vadd.f32 %v832_v4, %v3637_v20  ;;  %v750_v6 = vadd.f32 %v749_v12, %v3641_v43  ;;  %v771_v31 = vadd.f32 %v770_v17, %v3642_v28  ;;  %v792_v45 = vadd.f32 %v791_v18, %v3643_v36  ;;  %v3651_v57 = vld [vmem:[#allocation71_spill] sm:$0xff]  ;;  %v3652_v52 = vld [vmem:[#allocation30_spill] sm:$0xff]  ;;  %v3653_v34 = vld [vmem:[#allocation72_spill] sm:$0xff] }
 0x127   : > { %v813_v27 = vadd.f32 %v812_v19, %v3644_v54  ;;  %v855_v51 = vadd.f32 %v854_v25, %v3646_v55  ;;  %v876_v56 = vadd.f32 %v875_v33, %v3647_v26  ;;  %v730_v0 = vadd.f32 %v729_v30, %v3648_v61  ;;  %v3654_v29 = vld [vmem:[#allocation31_spill] sm:$0xff]  ;;  %v3655_v9 = vld [vmem:[#allocation73_spill] sm:$0xff]  ;;  %v3656_v16 = vld [vmem:[#allocation32_spill] sm:$0xff] }
 0x128   : > { %v834_v50 = vadd.f32 %v833_v24, %v3645_v48  ;;  %v751_v40 = vadd.f32 %v750_v6, %v3649_v38  ;;  %v772_v58 = vadd.f32 %v771_v31, %v3650_v46  ;;  %v793_v1 = vadd.f32 %v792_v45, %v3651_v57  ;;  %v3657_v7 = vld [vmem:[#allocation74_spill] sm:$0xff]  ;;  %v3658_v22 = vld [vmem:[#allocation33_spill] sm:$0xff]  ;;  %v3659_v14 = vld [vmem:[#allocation75_spill] sm:$0xff] }
 0x129   : > { %v814_v44 = vadd.f32 %v813_v27, %v3652_v52  ;;  %v856_v3 = vadd.f32 %v855_v51, %v3654_v29  ;;  %v877_v4 = vadd.f32 %v876_v56, %v3655_v9  ;;  %v731_v5 = vadd.f32 %v730_v0, %v3656_v16  ;;  %v3660_v15 = vld [vmem:[#allocation34_spill] sm:$0xff]  ;;  %v3661_v21 = vld [vmem:[#allocation76_spill] sm:$0xff]  ;;  %v3662_v13 = vld [vmem:[#allocation35_spill] sm:$0xff] }
 0x12a   : > { %v835_v2 = vadd.f32 %v834_v50, %v3653_v34  ;;  %v752_v10 = vadd.f32 %v751_v40, %v3657_v7  ;;  %v773_v11 = vadd.f32 %v772_v58, %v3658_v22  ;;  %v794_v12 = vadd.f32 %v793_v1, %v3659_v14  ;;  %v3663_v20 = vld [vmem:[#allocation77_spill] sm:$0xff]  ;;  %v3664_v8 = vld [vmem:[#allocation36_spill] sm:$0xff]  ;;  %v3665_v49 = vld [vmem:[#allocation78_spill] sm:$0xff] }
 0x12b   : > { %v815_v17 = vadd.f32 %v814_v44, %v3660_v15  ;;  %v857_v19 = vadd.f32 %v856_v3, %v3662_v13  ;;  %v878_v24 = vadd.f32 %v877_v4, %v3663_v20  ;;  %v732_v25 = vadd.f32 %v731_v5, %v3664_v8  ;;  %v3666_v32 = vld [vmem:[#allocation37_spill] sm:$0xff]  ;;  %v3667_v6 = vld [vmem:[#allocation79_spill] sm:$0xff]  ;;  %v3668_v31 = vld [vmem:[#allocation38_spill] sm:$0xff] }
 0x12c   : > { %v836_v18 = vadd.f32 %v835_v2, %v3661_v21  ;;  %v753_v33 = vadd.f32 %v752_v10, %v3665_v49  ;;  %v774_v30 = vadd.f32 %v773_v11, %v3666_v32  ;;  %v795_v43 = vadd.f32 %v794_v12, %v2628_v59  ;;  %v3669_v45 = vld [vmem:[#allocation80_spill] sm:$0xff]  ;;  %v3670_v27 = vld [vmem:[#allocation39_spill] sm:$0xff]  ;;  %v3671_v50 = vld [vmem:[#allocation81_spill] sm:$0xff] }
 0x12d   : > { %v816_v28 = vadd.f32 %v815_v17, %v3667_v6  ;;  %v858_v54 = vadd.f32 %v857_v19, %v3669_v45  ;;  %v879_v48 = vadd.f32 %v878_v24, %v3670_v27  ;;  %v733_v55 = vadd.f32 %v732_v25, %v3671_v50  ;;  %v3672_v51 = vld [vmem:[#allocation40_spill] sm:$0xff]  ;;  %v3673_v56 = vld [vmem:[#allocation41_spill] sm:$0xff]  ;;  %v3674_v38 = vld [vmem:[#allocation82_spill] sm:$0xff] }
 0x12e   : > { %v837_v36 = vadd.f32 %v836_v18, %v3668_v31  ;;  %v754_v26 = vadd.f32 %v753_v33, %v3672_v51  ;;  %v775_v61 = vadd.f32 %v774_v30, %v3673_v56  ;;  %v796_v0 = vadd.f32 %v795_v43, %v2676_v23  ;;  %v3675_v46 = vld [vmem:[#allocation42_spill] sm:$0xff]  ;;  %v3676_v1 = vld [vmem:[#allocation83_spill] sm:$0xff]  ;;  %v3678_v2 = vld [vmem:[#allocation84_spill] sm:$0xff] }
 0x12f   : > { %v817_v40 = vadd.f32 %v816_v28, %v3674_v38  ;;  %v859_v58 = vadd.f32 %v858_v54, %v3675_v46  ;;  %v880_v57 = vadd.f32 %v879_v48, %v2700_v41  ;;  %v734_v52 = vadd.f32 %v733_v55, %v3676_v1  ;;  %v3677_v44 = vld [vmem:[#allocation43_spill] sm:$0xff]  ;;  %v3679_v9 = vld [vmem:[#allocation44_spill] sm:$0xff]  ;;  %v3680_v16 = vld [vmem:[#allocation45_spill] sm:$0xff] }
 0x130   : > { %v838_v59 = vadd.f32 %v837_v36, %v2688_v47  ;;  %v755_v34 = vadd.f32 %v754_v26, %v3677_v44  ;;  %v776_v29 = vadd.f32 %v775_v61, %v3678_v2  ;;  %v797_v3 = vadd.f32 %v796_v0, %v2724_v35  ;;  %v3681_v7 = vld [vmem:[#allocation46_spill] sm:$0xff]  ;;  %v3682_v22 = vld [vmem:[#allocation47_spill] sm:$0xff]  ;;  %v3683_v11 = vld [vmem:[#allocation85_spill] sm:$0xff] }
 0x131   : > { %v818_v4 = vadd.f32 %v817_v40, %v3679_v9  ;;  %v860_v5 = vadd.f32 %v859_v58, %v3680_v16  ;;  %v881_v47 = vadd.f32 %v880_v57, %v2748_v39  ;;  %v735_v10 = vadd.f32 %v734_v52, %v3681_v7 }
 0x132   : > { %v839_v23 = vadd.f32 %v838_v59, %v2736_v63  ;;  %v756_v41 = vadd.f32 %v755_v34, %v3682_v22  ;;  %v777_v14 = vadd.f32 %v776_v29, %v3683_v11  ;;  %v798_v12 = vadd.f32 %v797_v3, %v2772_v42 }
 0x133   : > { %v819_v15 = vadd.f32 %v818_v4, %v2778_v37  ;;  %v861_v17 = vadd.f32 %v860_v5, %v2790_v53  ;;  %v882_v63 = vadd.f32 %v881_v47, %v2796_v62  ;;  %v736_v21 = vrot.slane %v735_v10, 4 }
 0x134   : > { %v840_v35 = vadd.f32 %v839_v23, %v2784_v60  ;;  %v757_v18 = vrot.slane %v756_v41, 4  ;;  %v778_v13 = vrot.slane %v777_v14, 4  ;;  %v799_v39 = vrot.slane %v798_v12, 4 }
 0x135   : > { %v820_v19 = vrot.slane %v819_v15, 4  ;;  %v862_v24 = vrot.slane %v861_v17, 4  ;;  %v883_v8 = vrot.slane %v882_v63, 4  ;;  %v737_v25 = vadd.f32 %v736_v21, %v735_v10 }
 0x136   : > { %v841_v20 = vrot.slane %v840_v35, 4  ;;  %v758_v49 = vadd.f32 %v757_v18, %v756_v41  ;;  %v779_v33 = vadd.f32 %v778_v13, %v777_v14  ;;  %v800_v42 = vadd.f32 %v799_v39, %v798_v12 }
 0x137   : > { %v821_v32 = vadd.f32 %v820_v19, %v819_v15  ;;  %v863_v30 = vadd.f32 %v862_v24, %v861_v17  ;;  %v884_v60 = vadd.f32 %v883_v8, %v882_v63  ;;  %v738_v43 = vrot.slane %v737_v25, 2 }
 0x138   : > { %v842_v37 = vadd.f32 %v841_v20, %v840_v35  ;;  %v759_v53 = vrot.slane %v758_v49, 2  ;;  %v780_v62 = vrot.slane %v779_v33, 2  ;;  %v801_v6 = vrot.slane %v800_v42, 2 }
 0x139   : > { %v822_v28 = vrot.slane %v821_v32, 2  ;;  %v864_v36 = vrot.slane %v863_v30, 2  ;;  %v885_v45 = vrot.slane %v884_v60, 2  ;;  %v739_v54 = vadd.f32 %v738_v43, %v737_v25 }
 0x13a   : > { %v843_v31 = vrot.slane %v842_v37, 2  ;;  %v760_v27 = vadd.f32 %v759_v53, %v758_v49  ;;  %v781_v48 = vadd.f32 %v780_v62, %v779_v33  ;;  %v802_v50 = vadd.f32 %v801_v6, %v800_v42 }
 0x13b   : > { %v823_v55 = vadd.f32 %v822_v28, %v821_v32  ;;  %v865_v26 = vadd.f32 %v864_v36, %v863_v30  ;;  %v886_v56 = vadd.f32 %v885_v45, %v884_v60  ;;  %v740_v61 = vrot.slane %v739_v54, 1 }
 0x13c   : > { %v844_v51 = vadd.f32 %v843_v31, %v842_v37  ;;  %v761_v0 = vrot.slane %v760_v27, 1  ;;  %v782_v38 = vrot.slane %v781_v48, 1  ;;  %v803_v40 = vrot.slane %v802_v50, 1 }
 0x13d   : > { %v824_v59 = vrot.slane %v823_v55, 1  ;;  %v866_v58 = vrot.slane %v865_v26, 1  ;;  %v887_v57 = vrot.slane %v886_v56, 1  ;;  %v741_v1 = vadd.f32 %v740_v61, %v739_v54 }
 0x13e   : > { %v845_v46 = vrot.slane %v844_v51, 1  ;;  %v762_v52 = vadd.f32 %v761_v0, %v760_v27  ;;  %v783_v44 = vadd.f32 %v782_v38, %v781_v48  ;;  %v804_v34 = vadd.f32 %v803_v40, %v802_v50 }
 0x13f   : > { %v825_v2 = vadd.f32 %v824_v59, %v823_v55  ;;  %v867_v3 = vadd.f32 %v866_v58, %v865_v26  ;;  %v888_v9 = vadd.f32 %v887_v57, %v886_v56 }
 0x140   : > { %v846_v29 = vadd.f32 %v845_v46, %v844_v51  ;;  %v897_v4 = vrot.slane %v762_v52, 7  ;;  %v898_v23 = vrot.slane %v783_v44, 6  ;;  %v899_v16 = vrot.slane %v804_v34, 5 }
 0x141   : > { %v900_v5 = vrot.slane %v825_v2, 4  ;;  %v902_v7 = vrot.slane %v867_v3, 2  ;;  %v903_v10 = vrot.slane %v888_v9, 1 }
 0x142   : > { %v901_v47 = vrot.slane %v846_v29, 3  ;;  %v905_v22 = vsel %vm904_vm0, %v741_v1, %v897_v4  ;;  %v907_v41 = vsel %vm906_vm1, %v898_v23, %v899_v16 }
 0x143   : > { %v909_v14 = vsel %vm908_vm2, %v905_v22, %v907_v41  ;;  %v913_v12 = vsel %vm912_vm4, %v902_v7, %v903_v10 }
 0x144   : > { %v911_v11 = vsel %vm910_vm3, %v900_v5, %v901_v47 }
 0x145   : > { %v915_v15 = vsel %vm914_vm5, %v911_v11, %v913_v12 }
 0x146   : > { %v917_v35 = vsel %vm916_vm6, %v909_v14, %v915_v15 }
 0x147   : > { %919 = vst [vmem:[%s205_s13] sm:$0xff] %v917_v35 }
 0x148   : > { %1189 = shalt.err (!%p1186_p3)
}
 0x149   : > { %1052 = dma.vmem_to_hbm [thread:$0]  (%p1301_p10), %s934_s16, 128, %s936_s17, %s921_s19  }
 0x14a PF: > { %p1066_p4 = scmp.ge.s32.totalorder %s1232_s12, 2  ;;  %s947_s23 = sand.u32 1, %s1220_s9  }
 0x14b   : > { %s948_s7 = scalar_lea.sflag [#allocation4], %s947_s23 }
 0x14c   : > { %p1062_p13 = pnand %p1066_p4, %p1305_p11 }
 0x14e   : > { %p1063_p5 = pneg %p1062_p13 }
 0x150   : > { %1215 = dma.done.wait (%p1063_p5), %s948_s7, 128  }
 0x151   : > { %1217 = vsyncadd (%p1063_p5), %s948_s7, 4294967168  ;;  %p18_p7 = scmp.ge.s32.totalorder %s1277_s15, 5   ;;  %s3684_s9 = smov %s1224_s10 }
 0x152   : > { %s3685_s10 = smov %s1228_s11  ;;  %s3686_s11 = smov %s1289_s18 }
 0x153   : > { %s3687_s12 = smov %s1277_s15  ;;  %20 = sbr.rel (!%p18_p7) target bundleno = 9 (0x9), region = 86 }
 0x158   :  { %954 = vsyncpa [#allocation3], 1 }
 0x159   :  { %956 = vsyncpa [#allocation3 + $0x1], 1 }
 0x15a   :  { %957 = vsyncpa [#allocation6], 1 }
 0x15b   :  { %959 = vsyncpa [#allocation6 + $0x1], 1 }
 0x15c   :  { %960 = vsyncpa [#allocation4], 1 }
 0x15d   :  { %962 = vsyncpa [#allocation4 + $0x1], 1 }

</bundles_post_ra>
